<compile_context>
chip_gen: v7x
topology: tpu7x:2x2x1
jax: 0.10.0
libtpu: 0.0.40
codegen_flags: <defaults>
</compile_context>

<pallas_src>
import jax
import jax.numpy as jnp
import numpy as np
from jax.experimental import pallas as pl
from jax.experimental.pallas import tpu as pltpu


# ----------------------------------------------------------------------------
# Fused kernel: all LSTM layers (wavefront-scheduled) + linear head.
# Everything is VMEM-resident (< 100 KiB at these shapes, far under VMEM).
# ----------------------------------------------------------------------------
def make_fused_kernel(num_layers, T, B, H, O):
    # B here is the PADDED batch (multiple of 8).
    def kernel(x_ref, *refs):
        # refs layout (in order of pallas_call args):
        #   per layer: w_ih (F_in,4H), w_hh (H,4H), b (1,4H)   -> 3*L refs
        #   w_out (H,O), b_out (1,O)                           -> 2 refs
        #   o_ref (B,O)                                        -> output
        w_out_ref = refs[3 * num_layers]
        b_out_ref = refs[3 * num_layers + 1]
        o_ref = refs[3 * num_layers + 2]

        # Load all weights once (they stay in vregs/VMEM for the whole kernel).
        w_ih = [refs[3 * l][...] for l in range(num_layers)]
        w_hh = [refs[3 * l + 1][...] for l in range(num_layers)]
        b = [refs[3 * l + 2][...] for l in range(num_layers)]

        # g-gate column mask, computed ONCE (hoisted out of all loops).
        # The g-gate pre-activations were scaled by 2 in the wrapper, so
        # tanh(x) = 2*sigmoid(2x) - 1 = sig + mask*(sig - 1) with mask=1 on
        # the g columns and 0 elsewhere.
        col = jax.lax.broadcasted_iota(jnp.int32, (B, 4 * H), 1)
        g_mask = ((col >= 2 * H) & (col < 3 * H)).astype(jnp.float32)

        # Layer-0 input projection for ALL timesteps as one matmul; bias
        # folded in here (hoisted off the recurrence).
        xg0 = jnp.dot(x_ref[...], w_ih[0],
                      preferred_element_type=jnp.float32) + b[0]   # (T*B, 4H)

        h = [jnp.zeros((B, H), jnp.float32) for _ in range(num_layers)]
        c = [jnp.zeros((B, H), jnp.float32) for _ in range(num_layers)]

        def lstm_step(l, xg_t):
            gates = xg_t + jnp.dot(h[l], w_hh[l],
                                   preferred_element_type=jnp.float32)  # (B,4H)
            # Single full-tile sigmoid (EUP); g-gate recovered via one FMA.
            sig = jax.nn.sigmoid(gates)
            act = sig + g_mask * (sig - 1.0)
            i_g = act[:, 0:H]
            f_g = act[:, H:2 * H]
            g_g = act[:, 2 * H:3 * H]
            o_g = act[:, 3 * H:4 * H]
            c[l] = f_g * c[l] + i_g * g_g
            h[l] = o_g * jnp.tanh(c[l])

        # Wavefront schedule: in wave w, layer l processes timestep t = w - l.
        # Layer l at time t only needs layer l-1 at time t (computed in the
        # previous wave) and its own state from t-1, so the per-wave work of
        # different layers is independent and pipelines in the VLIW bundles.
        # Iterating layers high->low inside a wave keeps h[l-1] at step t
        # until layer l has consumed it.  Trace-time unrolled (T, L small).
        for wave in range(T + num_layers - 1):
            for l in reversed(range(num_layers)):
                t = wave - l
                if 0 <= t < T:
                    if l == 0:
                        xg_t = xg0[t * B:(t + 1) * B, :]   # sublane-aligned slice
                    else:
                        xg_t = jnp.dot(h[l - 1], w_ih[l],
                                       preferred_element_type=jnp.float32) + b[l]
                    lstm_step(l, xg_t)

        # Linear head on the last timestep's hidden state of the top layer,
        # fused in the epilogue (no separate pallas_call).
        o_ref[...] = jnp.dot(h[num_layers - 1], w_out_ref[...],
                             preferred_element_type=jnp.float32) + b_out_ref[...]

    return kernel


# ----------------------------------------------------------------------------
# Full forward (mirrors TemperaturePredictorLSTM.forward)
# ----------------------------------------------------------------------------
def temperature_predictor_forward(params, x):
    # x: (B, T, F) batch-first, like the PyTorch module.
    B, T, F = x.shape
    layers = params["lstm"]
    L = len(layers)
    H = layers[0]["w_hh"].shape[0]
    O = params["w_out"].shape[1]

    # Pad batch to the f32 sublane granularity (8) so every per-timestep row
    # slice is a full, vreg-aligned sublane group inside the kernel.
    Bp = max(8, -(-B // 8) * 8)

    x_f32 = x.astype(jnp.float32)
    if Bp != B:
        x_f32 = jnp.pad(x_f32, ((0, Bp - B), (0, 0), (0, 0)))
    # Time-major, flattened to 2D (row index = t*Bp + b); done in XLA where a
    # transpose/reshape is free relative to the kernel.
    x_2d = jnp.transpose(x_f32, (1, 0, 2)).reshape(T * Bp, F)

    # Pre-scale the g-gate (tanh) columns by 2 so the kernel only needs one
    # sigmoid tile per step (tanh recovered as 2*sigmoid(2x) - 1).
    gscale = jnp.ones((1, 4 * H), jnp.float32).at[:, 2 * H:3 * H].set(2.0)

    flat_inputs = [x_2d]
    for lyr in layers:
        flat_inputs += [lyr["w_ih"] * gscale, lyr["w_hh"] * gscale,
                        lyr["b"] * gscale]
    flat_inputs += [params["w_out"], params["b_out"]]

    vmem_spec = pl.BlockSpec(memory_space=pltpu.MemorySpace.VMEM)
    out = pl.pallas_call(
        make_fused_kernel(L, T, Bp, H, O),
        out_shape=jax.ShapeDtypeStruct((Bp, O), jnp.float32),
        in_specs=[vmem_spec] * len(flat_inputs),
        out_specs=vmem_spec,
    )(*flat_inputs)
    # TODO(synk): for large production batches, add a leading grid axis over
    # batch with dimension_semantics=("parallel",) to use both v7x TensorCores.
    return out[:B]


# ----------------------------------------------------------------------------
# Deterministic parameter init (PyTorch-style uniform(-1/sqrt(H), 1/sqrt(H)))
# ----------------------------------------------------------------------------
def init_params(key, input_features, hidden_units, num_lstm_layers, output_size=1):
    H = hidden_units
    bound = 1.0 / np.sqrt(H)
    layers = []
    for layer_idx in range(num_lstm_layers):
        f_in = input_features if layer_idx == 0 else H
        key, k1, k2, k3, k4 = jax.random.split(key, 5)
        w_ih = jax.random.uniform(k1, (4 * H, f_in), jnp.float32, -bound, bound)
        w_hh = jax.random.uniform(k2, (4 * H, H), jnp.float32, -bound, bound)
        b_ih = jax.random.uniform(k3, (4 * H,), jnp.float32, -bound, bound)
        b_hh = jax.random.uniform(k4, (4 * H,), jnp.float32, -bound, bound)
        layers.append({
            "w_ih": w_ih.T,                           # (F_in, 4H)
            "w_hh": w_hh.T,                           # (H, 4H)
            "b": (b_ih + b_hh).reshape(1, 4 * H),     # (1, 4H)
        })
    key, k5, k6 = jax.random.split(key, 3)
    lin_bound = 1.0 / np.sqrt(H)
    w_out = jax.random.uniform(k5, (output_size, H), jnp.float32, -lin_bound, lin_bound)
    b_out = jax.random.uniform(k6, (output_size,), jnp.float32, -lin_bound, lin_bound)
    return {
        "lstm": layers,
        "w_out": w_out.T,                             # (H, O)
        "b_out": b_out.reshape(1, output_size),       # (1, O)
    }


# ----------------------------------------------------------------------------
# Pure-JAX reference (for correctness check) — uses the UNSCALED params.
# ----------------------------------------------------------------------------
def reference_forward(params, x):
    B, T, _ = x.shape
    x_tm = jnp.transpose(x, (1, 0, 2)).astype(jnp.float32)
    for layer in params["lstm"]:
        H = layer["w_hh"].shape[0]
        h = jnp.zeros((B, H), jnp.float32)
        c = jnp.zeros((B, H), jnp.float32)
        outs = []
        for t in range(T):
            gates = x_tm[t] @ layer["w_ih"] + h @ layer["w_hh"] + layer["b"]
            i_g = jax.nn.sigmoid(gates[:, 0:H])
            f_g = jax.nn.sigmoid(gates[:, H:2 * H])
            g_g = jnp.tanh(gates[:, 2 * H:3 * H])
            o_g = jax.nn.sigmoid(gates[:, 3 * H:4 * H])
            c = f_g * c + i_g * g_g
            h = o_g * jnp.tanh(c)
            outs.append(h)
        x_tm = jnp.stack(outs, axis=0)
    return x_tm[-1] @ params["w_out"] + params["b_out"]


if __name__ == "__main__":
    # Small shapes consistent with the module's forward.
    batch, seq_len, input_features = 2, 8, 4
    hidden_units, num_lstm_layers, output_size = 32, 2, 1

    key = jax.random.PRNGKey(0)
    key_params, key_x = jax.random.split(key)
    params = init_params(key_params, input_features, hidden_units,
                         num_lstm_layers, output_size)
    x = jax.random.normal(key_x, (batch, seq_len, input_features), jnp.float32)

    out = temperature_predictor_forward(params, x)
    out = jax.block_until_ready(out)

    ref = jax.block_until_ready(reference_forward(params, x))
    assert out.shape == (batch, output_size), out.shape
    np.testing.assert_allclose(np.asarray(out), np.asarray(ref),
                               rtol=1e-4, atol=1e-5)
    print("KERNEL_OK")
</pallas_src>

<mosaic_0001>
module attributes {stable_mosaic.version = 11 : i64} {
  func.func @kernel(%arg0: memref<64x4xf32, #tpu.memory_space<vmem>>, %arg1: memref<4x128xf32, #tpu.memory_space<vmem>>, %arg2: memref<32x128xf32, #tpu.memory_space<vmem>>, %arg3: memref<1x128xf32, #tpu.memory_space<vmem>>, %arg4: memref<32x128xf32, #tpu.memory_space<vmem>>, %arg5: memref<32x128xf32, #tpu.memory_space<vmem>>, %arg6: memref<1x128xf32, #tpu.memory_space<vmem>>, %arg7: memref<32x1xf32, #tpu.memory_space<vmem>>, %arg8: memref<1x1xf32, #tpu.memory_space<vmem>>, %arg9: memref<8x1xf32, #tpu.memory_space<vmem>>) attributes {dimension_semantics = [], scalar_prefetch = 0 : i64, scratch_operands = 0 : i64, tpu.core_type = #tpu.core_type<tc>} {
    %c0 = arith.constant 0 : index
    %c0_0 = arith.constant 0 : index
    %0 = vector.load %arg1[%c0, %c0_0] : memref<4x128xf32, #tpu.memory_space<vmem>>, vector<4x128xf32>
    %c0_1 = arith.constant 0 : index
    %c0_2 = arith.constant 0 : index
    %1 = vector.load %arg4[%c0_1, %c0_2] : memref<32x128xf32, #tpu.memory_space<vmem>>, vector<32x128xf32>
    %c0_3 = arith.constant 0 : index
    %c0_4 = arith.constant 0 : index
    %2 = vector.load %arg2[%c0_3, %c0_4] : memref<32x128xf32, #tpu.memory_space<vmem>>, vector<32x128xf32>
    %c0_5 = arith.constant 0 : index
    %c0_6 = arith.constant 0 : index
    %3 = vector.load %arg5[%c0_5, %c0_6] : memref<32x128xf32, #tpu.memory_space<vmem>>, vector<32x128xf32>
    %c0_7 = arith.constant 0 : index
    %c0_8 = arith.constant 0 : index
    %4 = vector.load %arg3[%c0_7, %c0_8] : memref<1x128xf32, #tpu.memory_space<vmem>>, vector<1x128xf32>
    %c0_9 = arith.constant 0 : index
    %c0_10 = arith.constant 0 : index
    %5 = vector.load %arg6[%c0_9, %c0_10] : memref<1x128xf32, #tpu.memory_space<vmem>>, vector<1x128xf32>
    %6 = tpu.iota {dimensions = array<i32: 1>} : vector<8x128xi32>
    %c64_i32 = arith.constant 64 : i32
    %7 = vector.broadcast %c64_i32 : i32 to vector<8x128xi32>
    %8 = arith.cmpi sge, %6, %7 : vector<8x128xi32>
    %c96_i32 = arith.constant 96 : i32
    %9 = vector.broadcast %c96_i32 : i32 to vector<8x128xi32>
    %10 = arith.cmpi slt, %6, %9 : vector<8x128xi32>
    %11 = arith.andi %8, %10 : vector<8x128xi1>
    %12 = arith.extui %11 : vector<8x128xi1> to vector<8x128xi32>
    %13 = arith.sitofp %12 : vector<8x128xi32> to vector<8x128xf32>
    %c0_11 = arith.constant 0 : index
    %c0_12 = arith.constant 0 : index
    %14 = vector.load %arg0[%c0_11, %c0_12] : memref<64x4xf32, #tpu.memory_space<vmem>>, vector<64x4xf32>
    %cst = arith.constant dense<0.000000e+00> : vector<64x128xf32>
    %15 = tpu.matmul %14, %0, %cst {dimension_numbers = #tpu.dot_dimension_numbers<[1], [0], [0], [1], [0, 0, 1, 1], [], []>} : vector<64x4xf32>, vector<4x128xf32>, vector<64x128xf32> -> vector<64x128xf32>
    %16 = vector.broadcast %4 : vector<1x128xf32> to vector<64x128xf32>
    %17 = arith.addf %15, %16 : vector<64x128xf32>
    %cst_13 = arith.constant 0.000000e+00 : f32
    %18 = vector.broadcast %cst_13 : f32 to vector<8x32xf32>
    %cst_14 = arith.constant 0.000000e+00 : f32
    %19 = vector.broadcast %cst_14 : f32 to vector<8x32xf32>
    %cst_15 = arith.constant 0.000000e+00 : f32
    %20 = vector.broadcast %cst_15 : f32 to vector<8x32xf32>
    %cst_16 = arith.constant 0.000000e+00 : f32
    %21 = vector.broadcast %cst_16 : f32 to vector<8x32xf32>
    %22 = vector.extract_strided_slice %17 {offsets = [0, 0], sizes = [8, 128], strides = [1, 1]} : vector<64x128xf32> to vector<8x128xf32>
    %cst_17 = arith.constant dense<0.000000e+00> : vector<8x128xf32>
    %23 = tpu.matmul %18, %2, %cst_17 {dimension_numbers = #tpu.dot_dimension_numbers<[1], [0], [0], [1], [0, 0, 1, 1], [], []>} : vector<8x32xf32>, vector<32x128xf32>, vector<8x128xf32> -> vector<8x128xf32>
    %24 = arith.addf %22, %23 : vector<8x128xf32>
    %25 = arith.negf %24 : vector<8x128xf32>
    %26 = math.exp %25 : vector<8x128xf32>
    %cst_18 = arith.constant 1.000000e+00 : f32
    %27 = vector.broadcast %cst_18 : f32 to vector<8x128xf32>
    %28 = arith.addf %27, %26 : vector<8x128xf32>
    %29 = arith.divf %27, %28 : vector<8x128xf32>
    %cst_19 = arith.constant 1.000000e+00 : f32
    %30 = vector.broadcast %cst_19 : f32 to vector<8x128xf32>
    %31 = arith.subf %29, %30 : vector<8x128xf32>
    %32 = arith.mulf %13, %31 : vector<8x128xf32>
    %33 = arith.addf %29, %32 : vector<8x128xf32>
    %34 = vector.extract_strided_slice %33 {offsets = [0, 0], sizes = [8, 32], strides = [1, 1]} : vector<8x128xf32> to vector<8x32xf32>
    %35 = vector.extract_strided_slice %33 {offsets = [0, 32], sizes = [8, 32], strides = [1, 1]} : vector<8x128xf32> to vector<8x32xf32>
    %36 = vector.extract_strided_slice %33 {offsets = [0, 64], sizes = [8, 32], strides = [1, 1]} : vector<8x128xf32> to vector<8x32xf32>
    %37 = vector.extract_strided_slice %33 {offsets = [0, 96], sizes = [8, 32], strides = [1, 1]} : vector<8x128xf32> to vector<8x32xf32>
    %38 = arith.mulf %35, %20 : vector<8x32xf32>
    %39 = arith.mulf %34, %36 : vector<8x32xf32>
    %40 = arith.addf %38, %39 : vector<8x32xf32>
    %41 = math.tanh %40 : vector<8x32xf32>
    %42 = arith.mulf %37, %41 : vector<8x32xf32>
    %cst_20 = arith.constant dense<0.000000e+00> : vector<8x128xf32>
    %43 = tpu.matmul %42, %1, %cst_20 {dimension_numbers = #tpu.dot_dimension_numbers<[1], [0], [0], [1], [0, 0, 1, 1], [], []>} : vector<8x32xf32>, vector<32x128xf32>, vector<8x128xf32> -> vector<8x128xf32>
    %44 = vector.broadcast %5 : vector<1x128xf32> to vector<8x128xf32>
    %45 = arith.addf %43, %44 : vector<8x128xf32>
    %cst_21 = arith.constant dense<0.000000e+00> : vector<8x128xf32>
    %46 = tpu.matmul %19, %3, %cst_21 {dimension_numbers = #tpu.dot_dimension_numbers<[1], [0], [0], [1], [0, 0, 1, 1], [], []>} : vector<8x32xf32>, vector<32x128xf32>, vector<8x128xf32> -> vector<8x128xf32>
    %47 = arith.addf %45, %46 : vector<8x128xf32>
    %48 = arith.negf %47 : vector<8x128xf32>
    %49 = math.exp %48 : vector<8x128xf32>
    %cst_22 = arith.constant 1.000000e+00 : f32
    %50 = vector.broadcast %cst_22 : f32 to vector<8x128xf32>
    %51 = arith.addf %50, %49 : vector<8x128xf32>
    %52 = arith.divf %50, %51 : vector<8x128xf32>
    %cst_23 = arith.constant 1.000000e+00 : f32
    %53 = vector.broadcast %cst_23 : f32 to vector<8x128xf32>
    %54 = arith.subf %52, %53 : vector<8x128xf32>
    %55 = arith.mulf %13, %54 : vector<8x128xf32>
    %56 = arith.addf %52, %55 : vector<8x128xf32>
    %57 = vector.extract_strided_slice %56 {offsets = [0, 0], sizes = [8, 32], strides = [1, 1]} : vector<8x128xf32> to vector<8x32xf32>
    %58 = vector.extract_strided_slice %56 {offsets = [0, 32], sizes = [8, 32], strides = [1, 1]} : vector<8x128xf32> to vector<8x32xf32>
    %59 = vector.extract_strided_slice %56 {offsets = [0, 64], sizes = [8, 32], strides = [1, 1]} : vector<8x128xf32> to vector<8x32xf32>
    %60 = vector.extract_strided_slice %56 {offsets = [0, 96], sizes = [8, 32], strides = [1, 1]} : vector<8x128xf32> to vector<8x32xf32>
    %61 = arith.mulf %58, %21 : vector<8x32xf32>
    %62 = arith.mulf %57, %59 : vector<8x32xf32>
    %63 = arith.addf %61, %62 : vector<8x32xf32>
    %64 = math.tanh %63 : vector<8x32xf32>
    %65 = arith.mulf %60, %64 : vector<8x32xf32>
    %66 = vector.extract_strided_slice %17 {offsets = [8, 0], sizes = [8, 128], strides = [1, 1]} : vector<64x128xf32> to vector<8x128xf32>
    %cst_24 = arith.constant dense<0.000000e+00> : vector<8x128xf32>
    %67 = tpu.matmul %42, %2, %cst_24 {dimension_numbers = #tpu.dot_dimension_numbers<[1], [0], [0], [1], [0, 0, 1, 1], [], []>} : vector<8x32xf32>, vector<32x128xf32>, vector<8x128xf32> -> vector<8x128xf32>
    %68 = arith.addf %66, %67 : vector<8x128xf32>
    %69 = arith.negf %68 : vector<8x128xf32>
    %70 = math.exp %69 : vector<8x128xf32>
    %cst_25 = arith.constant 1.000000e+00 : f32
    %71 = vector.broadcast %cst_25 : f32 to vector<8x128xf32>
    %72 = arith.addf %71, %70 : vector<8x128xf32>
    %73 = arith.divf %71, %72 : vector<8x128xf32>
    %cst_26 = arith.constant 1.000000e+00 : f32
    %74 = vector.broadcast %cst_26 : f32 to vector<8x128xf32>
    %75 = arith.subf %73, %74 : vector<8x128xf32>
    %76 = arith.mulf %13, %75 : vector<8x128xf32>
    %77 = arith.addf %73, %76 : vector<8x128xf32>
    %78 = vector.extract_strided_slice %77 {offsets = [0, 0], sizes = [8, 32], strides = [1, 1]} : vector<8x128xf32> to vector<8x32xf32>
    %79 = vector.extract_strided_slice %77 {offsets = [0, 32], sizes = [8, 32], strides = [1, 1]} : vector<8x128xf32> to vector<8x32xf32>
    %80 = vector.extract_strided_slice %77 {offsets = [0, 64], sizes = [8, 32], strides = [1, 1]} : vector<8x128xf32> to vector<8x32xf32>
    %81 = vector.extract_strided_slice %77 {offsets = [0, 96], sizes = [8, 32], strides = [1, 1]} : vector<8x128xf32> to vector<8x32xf32>
    %82 = arith.mulf %79, %40 : vector<8x32xf32>
    %83 = arith.mulf %78, %80 : vector<8x32xf32>
    %84 = arith.addf %82, %83 : vector<8x32xf32>
    %85 = math.tanh %84 : vector<8x32xf32>
    %86 = arith.mulf %81, %85 : vector<8x32xf32>
    %cst_27 = arith.constant dense<0.000000e+00> : vector<8x128xf32>
    %87 = tpu.matmul %86, %1, %cst_27 {dimension_numbers = #tpu.dot_dimension_numbers<[1], [0], [0], [1], [0, 0, 1, 1], [], []>} : vector<8x32xf32>, vector<32x128xf32>, vector<8x128xf32> -> vector<8x128xf32>
    %88 = vector.broadcast %5 : vector<1x128xf32> to vector<8x128xf32>
    %89 = arith.addf %87, %88 : vector<8x128xf32>
    %cst_28 = arith.constant dense<0.000000e+00> : vector<8x128xf32>
    %90 = tpu.matmul %65, %3, %cst_28 {dimension_numbers = #tpu.dot_dimension_numbers<[1], [0], [0], [1], [0, 0, 1, 1], [], []>} : vector<8x32xf32>, vector<32x128xf32>, vector<8x128xf32> -> vector<8x128xf32>
    %91 = arith.addf %89, %90 : vector<8x128xf32>
    %92 = arith.negf %91 : vector<8x128xf32>
    %93 = math.exp %92 : vector<8x128xf32>
    %cst_29 = arith.constant 1.000000e+00 : f32
    %94 = vector.broadcast %cst_29 : f32 to vector<8x128xf32>
    %95 = arith.addf %94, %93 : vector<8x128xf32>
    %96 = arith.divf %94, %95 : vector<8x128xf32>
    %cst_30 = arith.constant 1.000000e+00 : f32
    %97 = vector.broadcast %cst_30 : f32 to vector<8x128xf32>
    %98 = arith.subf %96, %97 : vector<8x128xf32>
    %99 = arith.mulf %13, %98 : vector<8x128xf32>
    %100 = arith.addf %96, %99 : vector<8x128xf32>
    %101 = vector.extract_strided_slice %100 {offsets = [0, 0], sizes = [8, 32], strides = [1, 1]} : vector<8x128xf32> to vector<8x32xf32>
    %102 = vector.extract_strided_slice %100 {offsets = [0, 32], sizes = [8, 32], strides = [1, 1]} : vector<8x128xf32> to vector<8x32xf32>
    %103 = vector.extract_strided_slice %100 {offsets = [0, 64], sizes = [8, 32], strides = [1, 1]} : vector<8x128xf32> to vector<8x32xf32>
    %104 = vector.extract_strided_slice %100 {offsets = [0, 96], sizes = [8, 32], strides = [1, 1]} : vector<8x128xf32> to vector<8x32xf32>
    %105 = arith.mulf %102, %63 : vector<8x32xf32>
    %106 = arith.mulf %101, %103 : vector<8x32xf32>
    %107 = arith.addf %105, %106 : vector<8x32xf32>
    %108 = math.tanh %107 : vector<8x32xf32>
    %109 = arith.mulf %104, %108 : vector<8x32xf32>
    %110 = vector.extract_strided_slice %17 {offsets = [16, 0], sizes = [8, 128], strides = [1, 1]} : vector<64x128xf32> to vector<8x128xf32>
    %cst_31 = arith.constant dense<0.000000e+00> : vector<8x128xf32>
    %111 = tpu.matmul %86, %2, %cst_31 {dimension_numbers = #tpu.dot_dimension_numbers<[1], [0], [0], [1], [0, 0, 1, 1], [], []>} : vector<8x32xf32>, vector<32x128xf32>, vector<8x128xf32> -> vector<8x128xf32>
    %112 = arith.addf %110, %111 : vector<8x128xf32>
    %113 = arith.negf %112 : vector<8x128xf32>
    %114 = math.exp %113 : vector<8x128xf32>
    %cst_32 = arith.constant 1.000000e+00 : f32
    %115 = vector.broadcast %cst_32 : f32 to vector<8x128xf32>
    %116 = arith.addf %115, %114 : vector<8x128xf32>
    %117 = arith.divf %115, %116 : vector<8x128xf32>
    %cst_33 = arith.constant 1.000000e+00 : f32
    %118 = vector.broadcast %cst_33 : f32 to vector<8x128xf32>
    %119 = arith.subf %117, %118 : vector<8x128xf32>
    %120 = arith.mulf %13, %119 : vector<8x128xf32>
    %121 = arith.addf %117, %120 : vector<8x128xf32>
    %122 = vector.extract_strided_slice %121 {offsets = [0, 0], sizes = [8, 32], strides = [1, 1]} : vector<8x128xf32> to vector<8x32xf32>
    %123 = vector.extract_strided_slice %121 {offsets = [0, 32], sizes = [8, 32], strides = [1, 1]} : vector<8x128xf32> to vector<8x32xf32>
    %124 = vector.extract_strided_slice %121 {offsets = [0, 64], sizes = [8, 32], strides = [1, 1]} : vector<8x128xf32> to vector<8x32xf32>
    %125 = vector.extract_strided_slice %121 {offsets = [0, 96], sizes = [8, 32], strides = [1, 1]} : vector<8x128xf32> to vector<8x32xf32>
    %126 = arith.mulf %123, %84 : vector<8x32xf32>
    %127 = arith.mulf %122, %124 : vector<8x32xf32>
    %128 = arith.addf %126, %127 : vector<8x32xf32>
    %129 = math.tanh %128 : vector<8x32xf32>
    %130 = arith.mulf %125, %129 : vector<8x32xf32>
    %cst_34 = arith.constant dense<0.000000e+00> : vector<8x128xf32>
    %131 = tpu.matmul %130, %1, %cst_34 {dimension_numbers = #tpu.dot_dimension_numbers<[1], [0], [0], [1], [0, 0, 1, 1], [], []>} : vector<8x32xf32>, vector<32x128xf32>, vector<8x128xf32> -> vector<8x128xf32>
    %132 = vector.broadcast %5 : vector<1x128xf32> to vector<8x128xf32>
    %133 = arith.addf %131, %132 : vector<8x128xf32>
    %cst_35 = arith.constant dense<0.000000e+00> : vector<8x128xf32>
    %134 = tpu.matmul %109, %3, %cst_35 {dimension_numbers = #tpu.dot_dimension_numbers<[1], [0], [0], [1], [0, 0, 1, 1], [], []>} : vector<8x32xf32>, vector<32x128xf32>, vector<8x128xf32> -> vector<8x128xf32>
    %135 = arith.addf %133, %134 : vector<8x128xf32>
    %136 = arith.negf %135 : vector<8x128xf32>
    %137 = math.exp %136 : vector<8x128xf32>
    %cst_36 = arith.constant 1.000000e+00 : f32
    %138 = vector.broadcast %cst_36 : f32 to vector<8x128xf32>
    %139 = arith.addf %138, %137 : vector<8x128xf32>
    %140 = arith.divf %138, %139 : vector<8x128xf32>
    %cst_37 = arith.constant 1.000000e+00 : f32
    %141 = vector.broadcast %cst_37 : f32 to vector<8x128xf32>
    %142 = arith.subf %140, %141 : vector<8x128xf32>
    %143 = arith.mulf %13, %142 : vector<8x128xf32>
    %144 = arith.addf %140, %143 : vector<8x128xf32>
    %145 = vector.extract_strided_slice %144 {offsets = [0, 0], sizes = [8, 32], strides = [1, 1]} : vector<8x128xf32> to vector<8x32xf32>
    %146 = vector.extract_strided_slice %144 {offsets = [0, 32], sizes = [8, 32], strides = [1, 1]} : vector<8x128xf32> to vector<8x32xf32>
    %147 = vector.extract_strided_slice %144 {offsets = [0, 64], sizes = [8, 32], strides = [1, 1]} : vector<8x128xf32> to vector<8x32xf32>
    %148 = vector.extract_strided_slice %144 {offsets = [0, 96], sizes = [8, 32], strides = [1, 1]} : vector<8x128xf32> to vector<8x32xf32>
    %149 = arith.mulf %146, %107 : vector<8x32xf32>
    %150 = arith.mulf %145, %147 : vector<8x32xf32>
    %151 = arith.addf %149, %150 : vector<8x32xf32>
    %152 = math.tanh %151 : vector<8x32xf32>
    %153 = arith.mulf %148, %152 : vector<8x32xf32>
    %154 = vector.extract_strided_slice %17 {offsets = [24, 0], sizes = [8, 128], strides = [1, 1]} : vector<64x128xf32> to vector<8x128xf32>
    %cst_38 = arith.constant dense<0.000000e+00> : vector<8x128xf32>
    %155 = tpu.matmul %130, %2, %cst_38 {dimension_numbers = #tpu.dot_dimension_numbers<[1], [0], [0], [1], [0, 0, 1, 1], [], []>} : vector<8x32xf32>, vector<32x128xf32>, vector<8x128xf32> -> vector<8x128xf32>
    %156 = arith.addf %154, %155 : vector<8x128xf32>
    %157 = arith.negf %156 : vector<8x128xf32>
    %158 = math.exp %157 : vector<8x128xf32>
    %cst_39 = arith.constant 1.000000e+00 : f32
    %159 = vector.broadcast %cst_39 : f32 to vector<8x128xf32>
    %160 = arith.addf %159, %158 : vector<8x128xf32>
    %161 = arith.divf %159, %160 : vector<8x128xf32>
    %cst_40 = arith.constant 1.000000e+00 : f32
    %162 = vector.broadcast %cst_40 : f32 to vector<8x128xf32>
    %163 = arith.subf %161, %162 : vector<8x128xf32>
    %164 = arith.mulf %13, %163 : vector<8x128xf32>
    %165 = arith.addf %161, %164 : vector<8x128xf32>
    %166 = vector.extract_strided_slice %165 {offsets = [0, 0], sizes = [8, 32], strides = [1, 1]} : vector<8x128xf32> to vector<8x32xf32>
    %167 = vector.extract_strided_slice %165 {offsets = [0, 32], sizes = [8, 32], strides = [1, 1]} : vector<8x128xf32> to vector<8x32xf32>
    %168 = vector.extract_strided_slice %165 {offsets = [0, 64], sizes = [8, 32], strides = [1, 1]} : vector<8x128xf32> to vector<8x32xf32>
    %169 = vector.extract_strided_slice %165 {offsets = [0, 96], sizes = [8, 32], strides = [1, 1]} : vector<8x128xf32> to vector<8x32xf32>
    %170 = arith.mulf %167, %128 : vector<8x32xf32>
    %171 = arith.mulf %166, %168 : vector<8x32xf32>
    %172 = arith.addf %170, %171 : vector<8x32xf32>
    %173 = math.tanh %172 : vector<8x32xf32>
    %174 = arith.mulf %169, %173 : vector<8x32xf32>
    %cst_41 = arith.constant dense<0.000000e+00> : vector<8x128xf32>
    %175 = tpu.matmul %174, %1, %cst_41 {dimension_numbers = #tpu.dot_dimension_numbers<[1], [0], [0], [1], [0, 0, 1, 1], [], []>} : vector<8x32xf32>, vector<32x128xf32>, vector<8x128xf32> -> vector<8x128xf32>
    %176 = vector.broadcast %5 : vector<1x128xf32> to vector<8x128xf32>
    %177 = arith.addf %175, %176 : vector<8x128xf32>
    %cst_42 = arith.constant dense<0.000000e+00> : vector<8x128xf32>
    %178 = tpu.matmul %153, %3, %cst_42 {dimension_numbers = #tpu.dot_dimension_numbers<[1], [0], [0], [1], [0, 0, 1, 1], [], []>} : vector<8x32xf32>, vector<32x128xf32>, vector<8x128xf32> -> vector<8x128xf32>
    %179 = arith.addf %177, %178 : vector<8x128xf32>
    %180 = arith.negf %179 : vector<8x128xf32>
    %181 = math.exp %180 : vector<8x128xf32>
    %cst_43 = arith.constant 1.000000e+00 : f32
    %182 = vector.broadcast %cst_43 : f32 to vector<8x128xf32>
    %183 = arith.addf %182, %181 : vector<8x128xf32>
    %184 = arith.divf %182, %183 : vector<8x128xf32>
    %cst_44 = arith.constant 1.000000e+00 : f32
    %185 = vector.broadcast %cst_44 : f32 to vector<8x128xf32>
    %186 = arith.subf %184, %185 : vector<8x128xf32>
    %187 = arith.mulf %13, %186 : vector<8x128xf32>
    %188 = arith.addf %184, %187 : vector<8x128xf32>
    %189 = vector.extract_strided_slice %188 {offsets = [0, 0], sizes = [8, 32], strides = [1, 1]} : vector<8x128xf32> to vector<8x32xf32>
    %190 = vector.extract_strided_slice %188 {offsets = [0, 32], sizes = [8, 32], strides = [1, 1]} : vector<8x128xf32> to vector<8x32xf32>
    %191 = vector.extract_strided_slice %188 {offsets = [0, 64], sizes = [8, 32], strides = [1, 1]} : vector<8x128xf32> to vector<8x32xf32>
    %192 = vector.extract_strided_slice %188 {offsets = [0, 96], sizes = [8, 32], strides = [1, 1]} : vector<8x128xf32> to vector<8x32xf32>
    %193 = arith.mulf %190, %151 : vector<8x32xf32>
    %194 = arith.mulf %189, %191 : vector<8x32xf32>
    %195 = arith.addf %193, %194 : vector<8x32xf32>
    %196 = math.tanh %195 : vector<8x32xf32>
    %197 = arith.mulf %192, %196 : vector<8x32xf32>
    %198 = vector.extract_strided_slice %17 {offsets = [32, 0], sizes = [8, 128], strides = [1, 1]} : vector<64x128xf32> to vector<8x128xf32>
    %cst_45 = arith.constant dense<0.000000e+00> : vector<8x128xf32>
    %199 = tpu.matmul %174, %2, %cst_45 {dimension_numbers = #tpu.dot_dimension_numbers<[1], [0], [0], [1], [0, 0, 1, 1], [], []>} : vector<8x32xf32>, vector<32x128xf32>, vector<8x128xf32> -> vector<8x128xf32>
    %200 = arith.addf %198, %199 : vector<8x128xf32>
    %201 = arith.negf %200 : vector<8x128xf32>
    %202 = math.exp %201 : vector<8x128xf32>
    %cst_46 = arith.constant 1.000000e+00 : f32
    %203 = vector.broadcast %cst_46 : f32 to vector<8x128xf32>
    %204 = arith.addf %203, %202 : vector<8x128xf32>
    %205 = arith.divf %203, %204 : vector<8x128xf32>
    %cst_47 = arith.constant 1.000000e+00 : f32
    %206 = vector.broadcast %cst_47 : f32 to vector<8x128xf32>
    %207 = arith.subf %205, %206 : vector<8x128xf32>
    %208 = arith.mulf %13, %207 : vector<8x128xf32>
    %209 = arith.addf %205, %208 : vector<8x128xf32>
    %210 = vector.extract_strided_slice %209 {offsets = [0, 0], sizes = [8, 32], strides = [1, 1]} : vector<8x128xf32> to vector<8x32xf32>
    %211 = vector.extract_strided_slice %209 {offsets = [0, 32], sizes = [8, 32], strides = [1, 1]} : vector<8x128xf32> to vector<8x32xf32>
    %212 = vector.extract_strided_slice %209 {offsets = [0, 64], sizes = [8, 32], strides = [1, 1]} : vector<8x128xf32> to vector<8x32xf32>
    %213 = vector.extract_strided_slice %209 {offsets = [0, 96], sizes = [8, 32], strides = [1, 1]} : vector<8x128xf32> to vector<8x32xf32>
    %214 = arith.mulf %211, %172 : vector<8x32xf32>
    %215 = arith.mulf %210, %212 : vector<8x32xf32>
    %216 = arith.addf %214, %215 : vector<8x32xf32>
    %217 = math.tanh %216 : vector<8x32xf32>
    %218 = arith.mulf %213, %217 : vector<8x32xf32>
    %cst_48 = arith.constant dense<0.000000e+00> : vector<8x128xf32>
    %219 = tpu.matmul %218, %1, %cst_48 {dimension_numbers = #tpu.dot_dimension_numbers<[1], [0], [0], [1], [0, 0, 1, 1], [], []>} : vector<8x32xf32>, vector<32x128xf32>, vector<8x128xf32> -> vector<8x128xf32>
    %220 = vector.broadcast %5 : vector<1x128xf32> to vector<8x128xf32>
    %221 = arith.addf %219, %220 : vector<8x128xf32>
    %cst_49 = arith.constant dense<0.000000e+00> : vector<8x128xf32>
    %222 = tpu.matmul %197, %3, %cst_49 {dimension_numbers = #tpu.dot_dimension_numbers<[1], [0], [0], [1], [0, 0, 1, 1], [], []>} : vector<8x32xf32>, vector<32x128xf32>, vector<8x128xf32> -> vector<8x128xf32>
    %223 = arith.addf %221, %222 : vector<8x128xf32>
    %224 = arith.negf %223 : vector<8x128xf32>
    %225 = math.exp %224 : vector<8x128xf32>
    %cst_50 = arith.constant 1.000000e+00 : f32
    %226 = vector.broadcast %cst_50 : f32 to vector<8x128xf32>
    %227 = arith.addf %226, %225 : vector<8x128xf32>
    %228 = arith.divf %226, %227 : vector<8x128xf32>
    %cst_51 = arith.constant 1.000000e+00 : f32
    %229 = vector.broadcast %cst_51 : f32 to vector<8x128xf32>
    %230 = arith.subf %228, %229 : vector<8x128xf32>
    %231 = arith.mulf %13, %230 : vector<8x128xf32>
    %232 = arith.addf %228, %231 : vector<8x128xf32>
    %233 = vector.extract_strided_slice %232 {offsets = [0, 0], sizes = [8, 32], strides = [1, 1]} : vector<8x128xf32> to vector<8x32xf32>
    %234 = vector.extract_strided_slice %232 {offsets = [0, 32], sizes = [8, 32], strides = [1, 1]} : vector<8x128xf32> to vector<8x32xf32>
    %235 = vector.extract_strided_slice %232 {offsets = [0, 64], sizes = [8, 32], strides = [1, 1]} : vector<8x128xf32> to vector<8x32xf32>
    %236 = vector.extract_strided_slice %232 {offsets = [0, 96], sizes = [8, 32], strides = [1, 1]} : vector<8x128xf32> to vector<8x32xf32>
    %237 = arith.mulf %234, %195 : vector<8x32xf32>
    %238 = arith.mulf %233, %235 : vector<8x32xf32>
    %239 = arith.addf %237, %238 : vector<8x32xf32>
    %240 = math.tanh %239 : vector<8x32xf32>
    %241 = arith.mulf %236, %240 : vector<8x32xf32>
    %242 = vector.extract_strided_slice %17 {offsets = [40, 0], sizes = [8, 128], strides = [1, 1]} : vector<64x128xf32> to vector<8x128xf32>
    %cst_52 = arith.constant dense<0.000000e+00> : vector<8x128xf32>
    %243 = tpu.matmul %218, %2, %cst_52 {dimension_numbers = #tpu.dot_dimension_numbers<[1], [0], [0], [1], [0, 0, 1, 1], [], []>} : vector<8x32xf32>, vector<32x128xf32>, vector<8x128xf32> -> vector<8x128xf32>
    %244 = arith.addf %242, %243 : vector<8x128xf32>
    %245 = arith.negf %244 : vector<8x128xf32>
    %246 = math.exp %245 : vector<8x128xf32>
    %cst_53 = arith.constant 1.000000e+00 : f32
    %247 = vector.broadcast %cst_53 : f32 to vector<8x128xf32>
    %248 = arith.addf %247, %246 : vector<8x128xf32>
    %249 = arith.divf %247, %248 : vector<8x128xf32>
    %cst_54 = arith.constant 1.000000e+00 : f32
    %250 = vector.broadcast %cst_54 : f32 to vector<8x128xf32>
    %251 = arith.subf %249, %250 : vector<8x128xf32>
    %252 = arith.mulf %13, %251 : vector<8x128xf32>
    %253 = arith.addf %249, %252 : vector<8x128xf32>
    %254 = vector.extract_strided_slice %253 {offsets = [0, 0], sizes = [8, 32], strides = [1, 1]} : vector<8x128xf32> to vector<8x32xf32>
    %255 = vector.extract_strided_slice %253 {offsets = [0, 32], sizes = [8, 32], strides = [1, 1]} : vector<8x128xf32> to vector<8x32xf32>
    %256 = vector.extract_strided_slice %253 {offsets = [0, 64], sizes = [8, 32], strides = [1, 1]} : vector<8x128xf32> to vector<8x32xf32>
    %257 = vector.extract_strided_slice %253 {offsets = [0, 96], sizes = [8, 32], strides = [1, 1]} : vector<8x128xf32> to vector<8x32xf32>
    %258 = arith.mulf %255, %216 : vector<8x32xf32>
    %259 = arith.mulf %254, %256 : vector<8x32xf32>
    %260 = arith.addf %258, %259 : vector<8x32xf32>
    %261 = math.tanh %260 : vector<8x32xf32>
    %262 = arith.mulf %257, %261 : vector<8x32xf32>
    %cst_55 = arith.constant dense<0.000000e+00> : vector<8x128xf32>
    %263 = tpu.matmul %262, %1, %cst_55 {dimension_numbers = #tpu.dot_dimension_numbers<[1], [0], [0], [1], [0, 0, 1, 1], [], []>} : vector<8x32xf32>, vector<32x128xf32>, vector<8x128xf32> -> vector<8x128xf32>
    %264 = vector.broadcast %5 : vector<1x128xf32> to vector<8x128xf32>
    %265 = arith.addf %263, %264 : vector<8x128xf32>
    %cst_56 = arith.constant dense<0.000000e+00> : vector<8x128xf32>
    %266 = tpu.matmul %241, %3, %cst_56 {dimension_numbers = #tpu.dot_dimension_numbers<[1], [0], [0], [1], [0, 0, 1, 1], [], []>} : vector<8x32xf32>, vector<32x128xf32>, vector<8x128xf32> -> vector<8x128xf32>
    %267 = arith.addf %265, %266 : vector<8x128xf32>
    %268 = arith.negf %267 : vector<8x128xf32>
    %269 = math.exp %268 : vector<8x128xf32>
    %cst_57 = arith.constant 1.000000e+00 : f32
    %270 = vector.broadcast %cst_57 : f32 to vector<8x128xf32>
    %271 = arith.addf %270, %269 : vector<8x128xf32>
    %272 = arith.divf %270, %271 : vector<8x128xf32>
    %cst_58 = arith.constant 1.000000e+00 : f32
    %273 = vector.broadcast %cst_58 : f32 to vector<8x128xf32>
    %274 = arith.subf %272, %273 : vector<8x128xf32>
    %275 = arith.mulf %13, %274 : vector<8x128xf32>
    %276 = arith.addf %272, %275 : vector<8x128xf32>
    %277 = vector.extract_strided_slice %276 {offsets = [0, 0], sizes = [8, 32], strides = [1, 1]} : vector<8x128xf32> to vector<8x32xf32>
    %278 = vector.extract_strided_slice %276 {offsets = [0, 32], sizes = [8, 32], strides = [1, 1]} : vector<8x128xf32> to vector<8x32xf32>
    %279 = vector.extract_strided_slice %276 {offsets = [0, 64], sizes = [8, 32], strides = [1, 1]} : vector<8x128xf32> to vector<8x32xf32>
    %280 = vector.extract_strided_slice %276 {offsets = [0, 96], sizes = [8, 32], strides = [1, 1]} : vector<8x128xf32> to vector<8x32xf32>
    %281 = arith.mulf %278, %239 : vector<8x32xf32>
    %282 = arith.mulf %277, %279 : vector<8x32xf32>
    %283 = arith.addf %281, %282 : vector<8x32xf32>
    %284 = math.tanh %283 : vector<8x32xf32>
    %285 = arith.mulf %280, %284 : vector<8x32xf32>
    %286 = vector.extract_strided_slice %17 {offsets = [48, 0], sizes = [8, 128], strides = [1, 1]} : vector<64x128xf32> to vector<8x128xf32>
    %cst_59 = arith.constant dense<0.000000e+00> : vector<8x128xf32>
    %287 = tpu.matmul %262, %2, %cst_59 {dimension_numbers = #tpu.dot_dimension_numbers<[1], [0], [0], [1], [0, 0, 1, 1], [], []>} : vector<8x32xf32>, vector<32x128xf32>, vector<8x128xf32> -> vector<8x128xf32>
    %288 = arith.addf %286, %287 : vector<8x128xf32>
    %289 = arith.negf %288 : vector<8x128xf32>
    %290 = math.exp %289 : vector<8x128xf32>
    %cst_60 = arith.constant 1.000000e+00 : f32
    %291 = vector.broadcast %cst_60 : f32 to vector<8x128xf32>
    %292 = arith.addf %291, %290 : vector<8x128xf32>
    %293 = arith.divf %291, %292 : vector<8x128xf32>
    %cst_61 = arith.constant 1.000000e+00 : f32
    %294 = vector.broadcast %cst_61 : f32 to vector<8x128xf32>
    %295 = arith.subf %293, %294 : vector<8x128xf32>
    %296 = arith.mulf %13, %295 : vector<8x128xf32>
    %297 = arith.addf %293, %296 : vector<8x128xf32>
    %298 = vector.extract_strided_slice %297 {offsets = [0, 0], sizes = [8, 32], strides = [1, 1]} : vector<8x128xf32> to vector<8x32xf32>
    %299 = vector.extract_strided_slice %297 {offsets = [0, 32], sizes = [8, 32], strides = [1, 1]} : vector<8x128xf32> to vector<8x32xf32>
    %300 = vector.extract_strided_slice %297 {offsets = [0, 64], sizes = [8, 32], strides = [1, 1]} : vector<8x128xf32> to vector<8x32xf32>
    %301 = vector.extract_strided_slice %297 {offsets = [0, 96], sizes = [8, 32], strides = [1, 1]} : vector<8x128xf32> to vector<8x32xf32>
    %302 = arith.mulf %299, %260 : vector<8x32xf32>
    %303 = arith.mulf %298, %300 : vector<8x32xf32>
    %304 = arith.addf %302, %303 : vector<8x32xf32>
    %305 = math.tanh %304 : vector<8x32xf32>
    %306 = arith.mulf %301, %305 : vector<8x32xf32>
    %cst_62 = arith.constant dense<0.000000e+00> : vector<8x128xf32>
    %307 = tpu.matmul %306, %1, %cst_62 {dimension_numbers = #tpu.dot_dimension_numbers<[1], [0], [0], [1], [0, 0, 1, 1], [], []>} : vector<8x32xf32>, vector<32x128xf32>, vector<8x128xf32> -> vector<8x128xf32>
    %308 = vector.broadcast %5 : vector<1x128xf32> to vector<8x128xf32>
    %309 = arith.addf %307, %308 : vector<8x128xf32>
    %cst_63 = arith.constant dense<0.000000e+00> : vector<8x128xf32>
    %310 = tpu.matmul %285, %3, %cst_63 {dimension_numbers = #tpu.dot_dimension_numbers<[1], [0], [0], [1], [0, 0, 1, 1], [], []>} : vector<8x32xf32>, vector<32x128xf32>, vector<8x128xf32> -> vector<8x128xf32>
    %311 = arith.addf %309, %310 : vector<8x128xf32>
    %312 = arith.negf %311 : vector<8x128xf32>
    %313 = math.exp %312 : vector<8x128xf32>
    %cst_64 = arith.constant 1.000000e+00 : f32
    %314 = vector.broadcast %cst_64 : f32 to vector<8x128xf32>
    %315 = arith.addf %314, %313 : vector<8x128xf32>
    %316 = arith.divf %314, %315 : vector<8x128xf32>
    %cst_65 = arith.constant 1.000000e+00 : f32
    %317 = vector.broadcast %cst_65 : f32 to vector<8x128xf32>
    %318 = arith.subf %316, %317 : vector<8x128xf32>
    %319 = arith.mulf %13, %318 : vector<8x128xf32>
    %320 = arith.addf %316, %319 : vector<8x128xf32>
    %321 = vector.extract_strided_slice %320 {offsets = [0, 0], sizes = [8, 32], strides = [1, 1]} : vector<8x128xf32> to vector<8x32xf32>
    %322 = vector.extract_strided_slice %320 {offsets = [0, 32], sizes = [8, 32], strides = [1, 1]} : vector<8x128xf32> to vector<8x32xf32>
    %323 = vector.extract_strided_slice %320 {offsets = [0, 64], sizes = [8, 32], strides = [1, 1]} : vector<8x128xf32> to vector<8x32xf32>
    %324 = vector.extract_strided_slice %320 {offsets = [0, 96], sizes = [8, 32], strides = [1, 1]} : vector<8x128xf32> to vector<8x32xf32>
    %325 = arith.mulf %322, %283 : vector<8x32xf32>
    %326 = arith.mulf %321, %323 : vector<8x32xf32>
    %327 = arith.addf %325, %326 : vector<8x32xf32>
    %328 = math.tanh %327 : vector<8x32xf32>
    %329 = arith.mulf %324, %328 : vector<8x32xf32>
    %330 = vector.extract_strided_slice %17 {offsets = [56, 0], sizes = [8, 128], strides = [1, 1]} : vector<64x128xf32> to vector<8x128xf32>
    %cst_66 = arith.constant dense<0.000000e+00> : vector<8x128xf32>
    %331 = tpu.matmul %306, %2, %cst_66 {dimension_numbers = #tpu.dot_dimension_numbers<[1], [0], [0], [1], [0, 0, 1, 1], [], []>} : vector<8x32xf32>, vector<32x128xf32>, vector<8x128xf32> -> vector<8x128xf32>
    %332 = arith.addf %330, %331 : vector<8x128xf32>
    %333 = arith.negf %332 : vector<8x128xf32>
    %334 = math.exp %333 : vector<8x128xf32>
    %cst_67 = arith.constant 1.000000e+00 : f32
    %335 = vector.broadcast %cst_67 : f32 to vector<8x128xf32>
    %336 = arith.addf %335, %334 : vector<8x128xf32>
    %337 = arith.divf %335, %336 : vector<8x128xf32>
    %cst_68 = arith.constant 1.000000e+00 : f32
    %338 = vector.broadcast %cst_68 : f32 to vector<8x128xf32>
    %339 = arith.subf %337, %338 : vector<8x128xf32>
    %340 = arith.mulf %13, %339 : vector<8x128xf32>
    %341 = arith.addf %337, %340 : vector<8x128xf32>
    %342 = vector.extract_strided_slice %341 {offsets = [0, 0], sizes = [8, 32], strides = [1, 1]} : vector<8x128xf32> to vector<8x32xf32>
    %343 = vector.extract_strided_slice %341 {offsets = [0, 32], sizes = [8, 32], strides = [1, 1]} : vector<8x128xf32> to vector<8x32xf32>
    %344 = vector.extract_strided_slice %341 {offsets = [0, 64], sizes = [8, 32], strides = [1, 1]} : vector<8x128xf32> to vector<8x32xf32>
    %345 = vector.extract_strided_slice %341 {offsets = [0, 96], sizes = [8, 32], strides = [1, 1]} : vector<8x128xf32> to vector<8x32xf32>
    %346 = arith.mulf %343, %304 : vector<8x32xf32>
    %347 = arith.mulf %342, %344 : vector<8x32xf32>
    %348 = arith.addf %346, %347 : vector<8x32xf32>
    %349 = math.tanh %348 : vector<8x32xf32>
    %350 = arith.mulf %345, %349 : vector<8x32xf32>
    %cst_69 = arith.constant dense<0.000000e+00> : vector<8x128xf32>
    %351 = tpu.matmul %350, %1, %cst_69 {dimension_numbers = #tpu.dot_dimension_numbers<[1], [0], [0], [1], [0, 0, 1, 1], [], []>} : vector<8x32xf32>, vector<32x128xf32>, vector<8x128xf32> -> vector<8x128xf32>
    %352 = vector.broadcast %5 : vector<1x128xf32> to vector<8x128xf32>
    %353 = arith.addf %351, %352 : vector<8x128xf32>
    %cst_70 = arith.constant dense<0.000000e+00> : vector<8x128xf32>
    %354 = tpu.matmul %329, %3, %cst_70 {dimension_numbers = #tpu.dot_dimension_numbers<[1], [0], [0], [1], [0, 0, 1, 1], [], []>} : vector<8x32xf32>, vector<32x128xf32>, vector<8x128xf32> -> vector<8x128xf32>
    %355 = arith.addf %353, %354 : vector<8x128xf32>
    %356 = arith.negf %355 : vector<8x128xf32>
    %357 = math.exp %356 : vector<8x128xf32>
    %cst_71 = arith.constant 1.000000e+00 : f32
    %358 = vector.broadcast %cst_71 : f32 to vector<8x128xf32>
    %359 = arith.addf %358, %357 : vector<8x128xf32>
    %360 = arith.divf %358, %359 : vector<8x128xf32>
    %cst_72 = arith.constant 1.000000e+00 : f32
    %361 = vector.broadcast %cst_72 : f32 to vector<8x128xf32>
    %362 = arith.subf %360, %361 : vector<8x128xf32>
    %363 = arith.mulf %13, %362 : vector<8x128xf32>
    %364 = arith.addf %360, %363 : vector<8x128xf32>
    %365 = vector.extract_strided_slice %364 {offsets = [0, 0], sizes = [8, 32], strides = [1, 1]} : vector<8x128xf32> to vector<8x32xf32>
    %366 = vector.extract_strided_slice %364 {offsets = [0, 32], sizes = [8, 32], strides = [1, 1]} : vector<8x128xf32> to vector<8x32xf32>
    %367 = vector.extract_strided_slice %364 {offsets = [0, 64], sizes = [8, 32], strides = [1, 1]} : vector<8x128xf32> to vector<8x32xf32>
    %368 = vector.extract_strided_slice %364 {offsets = [0, 96], sizes = [8, 32], strides = [1, 1]} : vector<8x128xf32> to vector<8x32xf32>
    %369 = arith.mulf %366, %327 : vector<8x32xf32>
    %370 = arith.mulf %365, %367 : vector<8x32xf32>
    %371 = arith.addf %369, %370 : vector<8x32xf32>
    %372 = math.tanh %371 : vector<8x32xf32>
    %373 = arith.mulf %368, %372 : vector<8x32xf32>
    %c0_73 = arith.constant 0 : index
    %c0_74 = arith.constant 0 : index
    %374 = vector.load %arg7[%c0_73, %c0_74] : memref<32x1xf32, #tpu.memory_space<vmem>>, vector<32x1xf32>
    %cst_75 = arith.constant dense<0.000000e+00> : vector<8x1xf32>
    %375 = tpu.matmul %373, %374, %cst_75 {dimension_numbers = #tpu.dot_dimension_numbers<[1], [0], [0], [1], [0, 0, 1, 1], [], []>} : vector<8x32xf32>, vector<32x1xf32>, vector<8x1xf32> -> vector<8x1xf32>
    %c0_76 = arith.constant 0 : index
    %c0_77 = arith.constant 0 : index
    %376 = vector.load %arg8[%c0_76, %c0_77] : memref<1x1xf32, #tpu.memory_space<vmem>>, vector<1x1xf32>
    %377 = vector.broadcast %376 : vector<1x1xf32> to vector<8x1xf32>
    %378 = arith.addf %375, %377 : vector<8x1xf32>
    %c0_78 = arith.constant 0 : index
    %c0_79 = arith.constant 0 : index
    %379 = vector.load %arg9[%c0_78, %c0_79] : memref<8x1xf32, #tpu.memory_space<vmem>>, vector<8x1xf32>
    tpu.vector_store %arg9[%c0_78, %c0_79], %378 {strides = array<i32>} : memref<8x1xf32, #tpu.memory_space<vmem>>, vector<8x1xf32>,
    return
  }
}

</mosaic_0001>

<bundles_post_ra>
// kernel: tpu_custom_call.1
= control target key start
LH: loop header
LB: loop body
LE: loop exit
PB: predicated region body
PF: predicated region fallthrough
CT: control target
= control target key end

     0   :  { %vm95_vm0 = vcmask 1043456   ;;  %vm70_vm1 = vcmask 31744   ;;  %v3260_v0 = vmov 0.0|0.0   ;;  %vm3261_vm2 = vmmov 0   ;;  %s3263_s23 = smov 64   ;;  %s3264_s24 = smov 32   ;;  %s3775_s2 = inlined_call_operand.vmem [shape: f32[32,128], index: 2, kind: input, shape index: {}]   ;;  %s3776_s1 = inlined_call_operand.vmem [shape: f32[4,128], index: 1, kind: input, shape index: {}]   ;;  %s3777_s0 = inlined_call_operand.vmem [shape: f32[64,4], index: 0, kind: input, shape index: {}]   ;;  %s3778_s3 = inlined_call_operand.vmem [shape: f32[1,128], index: 3, kind: input, shape index: {}]   ;;  %s3779_s4 = inlined_call_operand.vmem [shape: f32[32,128], index: 4, kind: input, shape index: {}]   ;;  %s3780_s5 = inlined_call_operand.vmem [shape: f32[32,128], index: 5, kind: input, shape index: {}]   ;;  %s3781_s6 = inlined_call_operand.vmem [shape: f32[1,128], index: 6, kind: input, shape index: {}]   ;;  %s3782_s7 = inlined_call_operand.vmem [shape: f32[32,1], index: 7, kind: input, shape index: {}]   ;;  %s3783_s8 = inlined_call_operand.<no memory space> [shape: f32[1,1], index: 8, kind: input, shape index: {}]   ;;  %s3784_s9 = inlined_call_operand.vmem [shape: f32[8,1], index: 9, kind: output, shape index: {}]  }
   0x1   :  { %2984 = vmatprep.subr.bf16.mxu1 %v3260_v0  ;;  %v39_v1 = vld [vmem:[%s3775_s2] sm:$0xff]  ;;  %v40_v2 = vld [vmem:[%s3775_s2 + $0x8] sm:$0xff]  ;;  %v41_v7 = vld [vmem:[%s3775_s2 + $0x10] sm:$0xff]  ;;  %v3262_v8 = vmov 0.0   ;;  %v49_v19 = vlaneseq  ;;  %vm204_vm6 = vcmask 261120   ;;  %vm2487_vm7 = vcmask 7168  }
   0x2   :  { %v34_v3 = vld [vmem:[%s3776_s1] sm:$0xf]  ;;  %v3325_v4 = vpack.c.bf16 %v40_v2, %v39_v1  ;;  %v57_v6 = vld [vmem:[%s3777_s0 + $0x8] sm:$0xff]  ;;  %2717 = vmatprep.mubr.msk.f32.mxu1 %vm3261_vm2, %v3262_v8  ;;  %v42_v9 = vld [vmem:[%s3775_s2 + $0x18] sm:$0xff] }
   0x3   :  { %2695 = vmatprep.subr.msk.mxu0 %vm95_vm0, %v34_v3  ;;  %v56_v5 = vld [vmem:[%s3777_s0] sm:$0xff]  ;;  %v3346_v10 = vpack.c.bf16 %v42_v9, %v41_v7  ;;  %v50_v22 = vand.u32 127, %v49_v19  ;;  %v58_v33 = vld [vmem:[%s3777_s0 + $0x10] sm:$0xff]  ;;  %v59_v34 = vld [vmem:[%s3777_s0 + $0x18] sm:$0xff] }
   0x4   :  { %2696 = vmatpush3.msk.msra.mxu0 %vm95_vm0, %v34_v3  ;;  %2697 = vmatprep.mubr.msk.f32.mxu0 %vm70_vm1, %v56_v5  ;;  %v3364_v12 = vld [vmem:[%s3778_s3] ss:$0 sm:$0xff]  ;;  %v36_v37 = vld [vmem:[%s3779_s4 + $0x8] sm:$0xff]  ;;  %v37_v39 = vld [vmem:[%s3779_s4 + $0x10] sm:$0xff] }
   0x5   :  { %2986 = vmatpush3.bf16.msra.mxu1 %v3325_v4  ;;  %2698 = vmatmul.mubr.msk.f32.vlgmr.msra.gmra.mrb[0].mxu0 %vm70_vm1, %v57_v6  ;;  %vm51_vm3 = vcmp.ge.s32.totalorder %v50_v22, 64  ;;  %vm52_vm4 = vcmp.lt.s32.totalorder %v50_v22, 96  ;;  %v60_v35 = vld [vmem:[%s3777_s0 + $0x20] sm:$0xff]  ;;  %v61_v40 = vld [vmem:[%s3777_s0 + $0x28] sm:$0xff]  ;;  %v38_v41 = vld [vmem:[%s3779_s4 + $0x18] sm:$0xff] }
   0x6   :  { %2987 = vmatprep.subr.bf16.mxu1 %v3260_v0  ;;  %3002 = vmatprep.subr.bf16.mxu0 %v3260_v0  ;;  %vm53_vm5 = vmand %vm51_vm3, %vm52_vm4  ;;  %v35_v36 = vld [vmem:[%s3779_s4] sm:$0xff]  ;;  %v62_v42 = vld [vmem:[%s3777_s0 + $0x30] sm:$0xff]  ;;  %v3409_v43 = vpack.c.bf16 %v38_v41, %v37_v39 }
   0x7   :  { %3004 = vmatpush3.bf16.msra.mxu0 %v3325_v4  ;;  %v3368_v24 = vsel %vm53_vm5, 1.0, %v3262_v8  ;;  %2700 = vmatprep.mubr.msk.f32.mxu0 %vm70_vm1, %v58_v33  ;;  %v3393_v38 = vpack.c.bf16 %v36_v37, %v35_v36  ;;  %v63_v44 = vld [vmem:[%s3777_s0 + $0x38] sm:$0xff]  ;;  %v43_v54 = vld [vmem:[%s3780_s5] sm:$0xff]  ;;  %v44_v55 = vld [vmem:[%s3780_s5 + $0x8] sm:$0xff] }
   0x8   :  { %3005 = vmatprep.subr.bf16.mxu0 %v3260_v0  ;;  %v3442_v56 = vpack.c.bf16 %v44_v55, %v43_v54  ;;  %v45_v57 = vld [vmem:[%s3780_s5 + $0x10] sm:$0xff]  ;;  %v46_v58 = vld [vmem:[%s3780_s5 + $0x18] sm:$0xff]  ;;  %v3478_v3 = vld [vmem:[%s3781_s6] ss:$0 sm:$0xff] }
   0x9   :  { %2989 = vmatpush3.bf16.msra.mxu1 %v3346_v10  ;;  %2701 = vmatmul.mubr.msk.f32.gmra.mrb[2].mxu0 %vm70_vm1, %v59_v34  ;;  %v3453_v60 = vpack.c.bf16 %v46_v58, %v45_v57 }
   0xa   :  { %2990 = vmatprep.subr.bf16.mxu1 %v3260_v0  ;;  %2703 = vmatprep.mubr.msk.f32.mxu0 %vm70_vm1, %v60_v35 }
   0xb   :  { %3007 = vmatpush3.bf16.msra.mxu0 %v3346_v10 }
   0xc   :  { %2718 = vmatmul.mubr.f32.vlgmr.msra.gmra.mrb[0].mxu1 %v3262_v8  ;;  %3008 = vmatprep.subr.bf16.mxu0 %v3260_v0 }
   0xd   :  { %2728 = vmatprep.mubr.msk.f32.mxu1 %vm3261_vm2, %v3262_v8  ;;  %2992 = vmatpush3.bf16.msra.mxu1 %v3393_v38 }
   0xe   :  { %2993 = vmatprep.subr.bf16.mxu1 %v3260_v0  ;;  %2704 = vmatmul.mubr.msk.f32.gmra.mrb[4].mxu0 %vm70_vm1, %v61_v40 }
   0xf   :  { %2706 = vmatprep.mubr.msk.f32.mxu0 %vm70_vm1, %v62_v42 }
  0x11   :  { %2995 = vmatpush3.bf16.msra.mxu1 %v3409_v43 }
  0x12   :  { %2996 = vmatprep.subr.bf16.mxu1 %v3260_v0  ;;  %2707 = vmatmul.mubr.msk.f32.gmra.mrb[6].mxu0 %vm70_vm1, %v63_v44 }
  0x13   :  { %2750 = vmatprep.mubr.msk.f32.mxu0 %vm3261_vm2, %v3262_v8 }
  0xd8   :  { %v3359_v11 = vpop.f32.mrb[0].mxu0 }
  0xd9   :  { %v165_v13 = vpop.f32.mrb[1].mxu0  ;;  %v171_v61 = vadd.f32 %v3359_v11, %v3364_v12 }
  0xda   :  { %v166_v14 = vadd.f32 %v3364_v12, %v165_v13 }
  0xdc   :  { %v3424_v48 = vpop.f32.mrb[2].mxu0 }
  0xdd   :  { %v3426_v49 = vpop.f32.mrb[3].mxu0 }
  0xdf   :  { %v274_v15 = vpop.f32.mrb[0].mxu1 }
  0xe0   :  { %v278_v16 = vadd.f32 %v274_v15, %v166_v14  ;;  %v2719_v17 = vpop.f32.mrb[1].mxu1 }
  0xe1   :  { %v3428_v50 = vpop.f32.mrb[4].mxu0 }
  0xe2   :  { %v2504_v18 = vmul.f32 -1.442695, %v278_v16  ;;  %v3430_v51 = vpop.f32.mrb[5].mxu0 }
  0xe4   :  { %3163 = vpow2.f32 %v2504_v18 }
  0xe5   :  { %v3432_v52 = vpop.f32.mrb[6].mxu0 }
  0xe6   :  { %v3434_v53 = vpop.f32.mrb[7].mxu0 }
  0xee   :  { %v3164_v20 = vpop.eup %3163 }
  0xef   :  { %v282_v21 = vadd.f32 1.0, %v3164_v20 }
  0xf1   :  { %3165 = vrcp.f32 %v282_v21 }
  0xfb   :  { %v3166_v23 = vpop.eup %3165 }
  0xfc   :  { %v2505_v25 = vadd.f32 -1.0, %v3166_v23 }
  0xfe   :  { %v286_v26 = vmul.f32 %v2505_v25, %v3368_v24 }
 0x100   :  { %v287_v27 = vadd.f32 %v3166_v23, %v286_v26 }
 0x102   :  { %290 = vrot.lane.b32.xlu0 %v287_v27, %s3263_s23  ;;  %v288_v30 = vmul.f32 0.0, %v287_v27 }
 0x174   :  { %v291_v28 = vpop.permute.xlu0 %290 }
 0x175   :  { %v293_v29 = vmul.f32 %v291_v28, %v287_v27 }
 0x177   :  { %295 = vrot.lane.b32.xlu0 %v293_v29, %s3264_s24 }
 0x1e9   :  { %v296_v31 = vpop.permute.xlu0 %295 }
 0x1ea   :  { %v3373_v32 = vadd.f32 %v296_v31, %v288_v30 }
 0x1ec   :  { %3167 = vtanh.f32 %v3373_v32 }
 0x1f6   :  { %v3168_v45 = vpop.eup %3167 }
 0x1f7   :  { %301 = vrot.lane.b32.xlu1 %v3168_v45, %s3263_s23  ;;  %v176_v45 = vadd.f32 %v3364_v12, %v3426_v49 }
 0x269   :  { %v302_v46 = vpop.permute.xlu1 %301 }
 0x26a   :  { %v304_v47 = vmul.f32 %v302_v46, %v287_v27 }
 0x26c   :  { %312 = vrot.lane.b32.xlu1 %v304_v47, %s3264_s24 }
 0x2de   :  { %v313_v59 = vpop.permute.xlu1 %312 }
 0x2df   :  { %2729 = vmatmul.mubr.msk.f32.vlgmr.msra.gmra.mrb[2].mxu1 %vm204_vm6, %v313_v59  ;;  %2751 = vmatmul.mubr.msk.f32.vlgmr.msra.gmra.mrb[8].mxu0 %vm204_vm6, %v313_v59 }
 0x2e0   :  { %2998 = vmatpush3.bf16.msra.mxu1 %v3442_v56  ;;  %2739 = vmatprep.mubr.msk.f32.mxu1 %vm3261_vm2, %v3262_v8 }
 0x2e1   :  { %2999 = vmatprep.subr.bf16.mxu1 %v3260_v0  ;;  %3010 = vmatpush3.bf16.msra.mxu0 %v3393_v38 }
 0x2e2   :  { %3011 = vmatprep.subr.bf16.mxu0 %v3260_v0  ;;  %2761 = vmatprep.mubr.msk.f32.mxu0 %vm3261_vm2, %v3262_v8 }
 0x2e4   :  { %3001 = vmatpush3.bf16.msra.mxu1 %v3453_v60 }
 0x2e5   :  { %3020 = vmatprep.subr.bf16.mxu1 %v3260_v0  ;;  %3013 = vmatpush3.bf16.msra.mxu0 %v3409_v43 }
 0x2e6   :  { %3014 = vmatprep.subr.bf16.mxu0 %v3260_v0 }
 0x2e7   :  { %2740 = vmatmul.mubr.f32.vlgmr.msra.gmra.mrb[2].mxu1 %v3262_v8 }
 0x2e8   :  { %3022 = vmatpush3.bf16.msra.mxu1 %v3325_v4  ;;  %2783 = vmatprep.mubr.msk.f32.mxu1 %vm3261_vm2, %v3262_v8 }
 0x2e9   :  { %3023 = vmatprep.subr.bf16.mxu1 %v3260_v0 }
 0x2ec   :  { %3025 = vmatpush3.bf16.msra.mxu1 %v3346_v10 }
 0x2ed   :  { %3026 = vmatprep.subr.bf16.mxu1 %v3260_v0 }
 0x3b2   :  { %v549_v62 = vpop.f32.mrb[8].mxu0 }
 0x3b3   :  { %v553_v63 = vadd.f32 %v549_v62, %v171_v61  ;;  %v2752_v1 = vpop.f32.mrb[9].mxu0 }
 0x3b5   :  { %v2511_v2 = vmul.f32 -1.442695, %v553_v63 }
 0x3b7   :  { %3169 = vpow2.f32 %v2511_v2 }
 0x3ba   :  { %v452_v5 = vpop.f32.mrb[2].mxu1 }
 0x3bb   :  { %v3134_v6 = vadd.f32 %v3478_v3, %v452_v5  ;;  %v2741_v7 = vpop.f32.mrb[3].mxu1 }
 0x3bd   :  { %v2508_v9 = vmul.f32 -1.442695, %v3134_v6 }
 0x3bf   :  { %3171 = vpow2.f32 %v2508_v9 }
 0x3c1   :  { %v3170_v13 = vpop.eup %3169 }
 0x3c2   :  { %v557_v14 = vadd.f32 1.0, %v3170_v13 }
 0x3c4   :  { %3173 = vrcp.f32 %v557_v14 }
 0x3c9   :  { %v3172_v11 = vpop.eup %3171 }
 0x3ca   :  { %v460_v15 = vadd.f32 1.0, %v3172_v11 }
 0x3cc   :  { %3175 = vrcp.f32 %v460_v15 }
 0x3ce   :  { %v3174_v16 = vpop.eup %3173 }
 0x3cf   :  { %v2512_v17 = vadd.f32 -1.0, %v3174_v16 }
 0x3d1   :  { %v561_v18 = vmul.f32 %v2512_v17, %v3368_v24 }
 0x3d3   :  { %v562_v19 = vadd.f32 %v3174_v16, %v561_v18 }
 0x3d5   :  { %565 = vrot.lane.b32.xlu0 %v562_v19, %s3263_s23  ;;  %v563_v29 = vmul.f32 %v562_v19, %v3373_v32 }
 0x3d6   :  { %v3176_v20 = vpop.eup %3175 }
 0x3d7   :  { %v2509_v21 = vadd.f32 -1.0, %v3176_v20 }
 0x3d9   :  { %v464_v22 = vmul.f32 %v2509_v21, %v3368_v24 }
 0x3db   :  { %v465_v23 = vadd.f32 %v3176_v20, %v464_v22 }
 0x3dd   :  { %468 = vrot.lane.b32.xlu1 %v465_v23, %s3263_s23  ;;  %v466_v33 = vmul.f32 0.0, %v465_v23 }
 0x447   :  { %v566_v25 = vpop.permute.xlu0 %565 }
 0x448   :  { %v568_v26 = vmul.f32 %v566_v25, %v562_v19 }
 0x44a   :  { %570 = vrot.lane.b32.xlu0 %v568_v26, %s3264_s24 }
 0x44f   :  { %v469_v27 = vpop.permute.xlu1 %468 }
 0x450   :  { %v471_v28 = vmul.f32 %v469_v27, %v465_v23 }
 0x452   :  { %473 = vrot.lane.b32.xlu1 %v471_v28, %s3264_s24 }
 0x4bc   :  { %v571_v30 = vpop.permute.xlu0 %570 }
 0x4bd   :  { %v3488_v31 = vadd.f32 %v571_v30, %v563_v29 }
 0x4bf   :  { %3177 = vtanh.f32 %v3488_v31 }
 0x4c4   :  { %v474_v34 = vpop.permute.xlu1 %473 }
 0x4c5   :  { %v3491_v35 = vadd.f32 %v474_v34, %v466_v33 }
 0x4c7   :  { %3179 = vtanh.f32 %v3491_v35 }
 0x4c9   :  { %v3178_v36 = vpop.eup %3177 }
 0x4ca   :  { %576 = vrot.lane.b32.xlu0 %v3178_v36, %s3263_s23 }
 0x4d1   :  { %v3180_v37 = vpop.eup %3179 }
 0x4d2   :  { %479 = vrot.lane.b32.xlu1 %v3180_v37, %s3263_s23 }
 0x53c   :  { %v577_v39 = vpop.permute.xlu0 %576 }
 0x53d   :  { %v579_v40 = vmul.f32 %v577_v39, %v562_v19 }
 0x53f   :  { %581 = vrot.lane.b32.xlu0 %v579_v40, %s3264_s24 }
 0x544   :  { %v480_v32 = vpop.permute.xlu1 %479 }
 0x545   :  { %v482_v41 = vmul.f32 %v480_v32, %v465_v23 }
 0x547   :  { %656 = vrot.lane.b32.xlu1 %v482_v41, %s3264_s24 }
 0x5b1   :  { %v582_v42 = vpop.permute.xlu0 %581 }
 0x5b2   :  { %2762 = vmatmul.mubr.msk.f32.vlgmr.msra.gmra.mrb[10].mxu0 %vm204_vm6, %v582_v42  ;;  %2784 = vmatmul.mubr.msk.f32.vlgmr.msra.gmra.mrb[4].mxu1 %vm204_vm6, %v582_v42 }
 0x5b3   :  { %3016 = vmatpush3.bf16.msra.mxu0 %v3442_v56  ;;  %2772 = vmatprep.mubr.msk.f32.mxu0 %vm3261_vm2, %v3262_v8 }
 0x5b4   :  { %3017 = vmatprep.subr.bf16.mxu0 %v3260_v0  ;;  %3028 = vmatpush3.bf16.msra.mxu1 %v3393_v38 }
 0x5b5   :  { %3029 = vmatprep.subr.bf16.mxu1 %v3260_v0  ;;  %2794 = vmatprep.mubr.msk.f32.mxu1 %vm3261_vm2, %v3262_v8 }
 0x5b7   :  { %3019 = vmatpush3.bf16.msra.mxu0 %v3453_v60 }
 0x5b8   :  { %3038 = vmatprep.subr.bf16.mxu0 %v3260_v0  ;;  %3031 = vmatpush3.bf16.msra.mxu1 %v3409_v43 }
 0x5b9   :  { %v657_v44 = vpop.permute.xlu1 %656  ;;  %3032 = vmatprep.subr.bf16.mxu1 %v3260_v0 }
 0x5ba   :  { %2773 = vmatmul.mubr.msk.f32.vlgmr.msra.gmra.mrb[10].mxu0 %vm204_vm6, %v657_v44 }
 0x5bb   :  { %3040 = vmatpush3.bf16.msra.mxu0 %v3325_v4  ;;  %2816 = vmatprep.mubr.msk.f32.mxu0 %vm3261_vm2, %v3262_v8 }
 0x5bc   :  { %3041 = vmatprep.subr.bf16.mxu0 %v3260_v0 }
 0x5bf   :  { %3043 = vmatpush3.bf16.msra.mxu0 %v3346_v10 }
 0x5c0   :  { %3044 = vmatprep.subr.bf16.mxu0 %v3260_v0 }
 0x685   :  { %v823_v46 = vpop.f32.mrb[4].mxu1 }
 0x686   :  { %v827_v47 = vadd.f32 %v823_v46, %v176_v45  ;;  %v2785_v54 = vpop.f32.mrb[5].mxu1 }
 0x688   :  { %v2518_v55 = vmul.f32 -1.442695, %v827_v47 }
 0x68a   :  { %3181 = vpow2.f32 %v2518_v55 }
 0x68d   :  { %v726_v57 = vpop.f32.mrb[10].mxu0 }
 0x68e   :  { %v3135_v58 = vadd.f32 %v3478_v3, %v726_v57  ;;  %v2774_v59 = vpop.f32.mrb[11].mxu0 }
 0x690   :  { %v2515_v61 = vmul.f32 -1.442695, %v3135_v58 }
 0x692   :  { %3183 = vpow2.f32 %v2515_v61 }
 0x694   :  { %v3182_v62 = vpop.eup %3181 }
 0x695   :  { %v831_v63 = vadd.f32 1.0, %v3182_v62 }
 0x697   :  { %3185 = vrcp.f32 %v831_v63 }
 0x69c   :  { %v3184_v1 = vpop.eup %3183 }
 0x69d   :  { %v734_v2 = vadd.f32 1.0, %v3184_v1 }
 0x69f   :  { %3187 = vrcp.f32 %v734_v2 }
 0x6a1   :  { %v3186_v5 = vpop.eup %3185 }
 0x6a2   :  { %v2519_v6 = vadd.f32 -1.0, %v3186_v5 }
 0x6a4   :  { %v835_v49 = vmul.f32 %v2519_v6, %v3368_v24 }
 0x6a6   :  { %v836_v7 = vadd.f32 %v3186_v5, %v835_v49 }
 0x6a8   :  { %839 = vrot.lane.b32.xlu0 %v836_v7, %s3263_s23  ;;  %v837_v19 = vmul.f32 %v836_v7, %v3488_v31 }
 0x6a9   :  { %v3188_v9 = vpop.eup %3187 }
 0x6aa   :  { %v2516_v13 = vadd.f32 -1.0, %v3188_v9 }
 0x6ac   :  { %v738_v14 = vmul.f32 %v2516_v13, %v3368_v24 }
 0x6ae   :  { %v739_v11 = vadd.f32 %v3188_v9, %v738_v14 }
 0x6b0   :  { %742 = vrot.lane.b32.xlu1 %v739_v11, %s3263_s23  ;;  %v740_v22 = vmul.f32 %v739_v11, %v3491_v35  ;;  %v181_v35 = vadd.f32 %v3424_v48, %v3364_v12 }
 0x71a   :  { %v840_v15 = vpop.permute.xlu0 %839 }
 0x71b   :  { %v842_v16 = vmul.f32 %v840_v15, %v836_v7 }
 0x71d   :  { %844 = vrot.lane.b32.xlu0 %v842_v16, %s3264_s24 }
 0x722   :  { %v743_v17 = vpop.permute.xlu1 %742 }
 0x723   :  { %v745_v18 = vmul.f32 %v743_v17, %v739_v11 }
 0x725   :  { %747 = vrot.lane.b32.xlu1 %v745_v18, %s3264_s24 }
 0x78f   :  { %v845_v20 = vpop.permute.xlu0 %844 }
 0x790   :  { %v3529_v21 = vadd.f32 %v845_v20, %v837_v19 }
 0x792   :  { %3189 = vtanh.f32 %v3529_v21 }
 0x797   :  { %v748_v23 = vpop.permute.xlu1 %747 }
 0x798   :  { %v3533_v25 = vadd.f32 %v748_v23, %v740_v22  ;;  %v186_v23 = vadd.f32 %v3364_v12, %v3430_v51 }
 0x79a   :  { %3191 = vtanh.f32 %v3533_v25 }
 0x79c   :  { %v3190_v26 = vpop.eup %3189 }
 0x79d   :  { %850 = vrot.lane.b32.xlu0 %v3190_v26, %s3263_s23 }
 0x7a4   :  { %v3192_v27 = vpop.eup %3191 }
 0x7a5   :  { %753 = vrot.lane.b32.xlu1 %v3192_v27, %s3263_s23 }
 0x80f   :  { %v851_v28 = vpop.permute.xlu0 %850 }
 0x810   :  { %v853_v29 = vmul.f32 %v851_v28, %v836_v7 }
 0x812   :  { %855 = vrot.lane.b32.xlu0 %v853_v29, %s3264_s24 }
 0x817   :  { %v754_v30 = vpop.permute.xlu1 %753 }
 0x818   :  { %v756_v31 = vmul.f32 %v754_v30, %v739_v11 }
 0x81a   :  { %930 = vrot.lane.b32.xlu1 %v756_v31, %s3264_s24 }
 0x884   :  { %v856_v33 = vpop.permute.xlu0 %855 }
 0x885   :  { %2795 = vmatmul.mubr.msk.f32.vlgmr.msra.gmra.mrb[6].mxu1 %vm204_vm6, %v856_v33  ;;  %2817 = vmatmul.mubr.msk.f32.vlgmr.msra.gmra.mrb[12].mxu0 %vm204_vm6, %v856_v33 }
 0x886   :  { %3034 = vmatpush3.bf16.msra.mxu1 %v3442_v56  ;;  %2805 = vmatprep.mubr.msk.f32.mxu1 %vm3261_vm2, %v3262_v8 }
 0x887   :  { %3035 = vmatprep.subr.bf16.mxu1 %v3260_v0  ;;  %3046 = vmatpush3.bf16.msra.mxu0 %v3393_v38 }
 0x888   :  { %3047 = vmatprep.subr.bf16.mxu0 %v3260_v0  ;;  %2827 = vmatprep.mubr.msk.f32.mxu0 %vm3261_vm2, %v3262_v8 }
 0x88a   :  { %3037 = vmatpush3.bf16.msra.mxu1 %v3453_v60 }
 0x88b   :  { %3056 = vmatprep.subr.bf16.mxu1 %v3260_v0  ;;  %3049 = vmatpush3.bf16.msra.mxu0 %v3409_v43 }
 0x88c   :  { %v931_v34 = vpop.permute.xlu1 %930  ;;  %3050 = vmatprep.subr.bf16.mxu0 %v3260_v0 }
 0x88d   :  { %2806 = vmatmul.mubr.msk.f32.vlgmr.msra.gmra.mrb[6].mxu1 %vm204_vm6, %v931_v34 }
 0x88e   :  { %3058 = vmatpush3.bf16.msra.mxu1 %v3325_v4  ;;  %2849 = vmatprep.mubr.msk.f32.mxu1 %vm3261_vm2, %v3262_v8 }
 0x88f   :  { %3059 = vmatprep.subr.bf16.mxu1 %v3260_v0 }
 0x892   :  { %3061 = vmatpush3.bf16.msra.mxu1 %v3346_v10 }
 0x893   :  { %3062 = vmatprep.subr.bf16.mxu1 %v3260_v0 }
 0x958   :  { %v1097_v36 = vpop.f32.mrb[12].mxu0 }
 0x959   :  { %v1101_v37 = vadd.f32 %v1097_v36, %v181_v35  ;;  %v2818_v39 = vpop.f32.mrb[13].mxu0 }
 0x95b   :  { %v2525_v40 = vmul.f32 -1.442695, %v1101_v37 }
 0x95d   :  { %3193 = vpow2.f32 %v2525_v40 }
 0x960   :  { %v1000_v32 = vpop.f32.mrb[6].mxu1 }
 0x961   :  { %v3136_v41 = vadd.f32 %v3478_v3, %v1000_v32  ;;  %v2807_v42 = vpop.f32.mrb[7].mxu1 }
 0x963   :  { %v2522_v44 = vmul.f32 -1.442695, %v3136_v41 }
 0x965   :  { %3195 = vpow2.f32 %v2522_v44 }
 0x967   :  { %v3194_v45 = vpop.eup %3193 }
 0x968   :  { %v1105_v46 = vadd.f32 1.0, %v3194_v45 }
 0x96a   :  { %3197 = vrcp.f32 %v1105_v46 }
 0x96f   :  { %v3196_v47 = vpop.eup %3195 }
 0x970   :  { %v1008_v54 = vadd.f32 1.0, %v3196_v47 }
 0x972   :  { %3199 = vrcp.f32 %v1008_v54 }
 0x974   :  { %v3198_v55 = vpop.eup %3197 }
 0x975   :  { %v2526_v57 = vadd.f32 -1.0, %v3198_v55 }
 0x977   :  { %v1109_v48 = vmul.f32 %v2526_v57, %v3368_v24 }
 0x979   :  { %v1110_v58 = vadd.f32 %v3198_v55, %v1109_v48 }
 0x97b   :  { %1113 = vrot.lane.b32.xlu0 %v1110_v58, %s3263_s23  ;;  %v1111_v49 = vmul.f32 %v1110_v58, %v3529_v21 }
 0x97c   :  { %v3200_v59 = vpop.eup %3199 }
 0x97d   :  { %v2523_v61 = vadd.f32 -1.0, %v3200_v59 }
 0x97f   :  { %v1012_v62 = vmul.f32 %v2523_v61, %v3368_v24 }
 0x981   :  { %v1013_v63 = vadd.f32 %v3200_v59, %v1012_v62 }
 0x983   :  { %1016 = vrot.lane.b32.xlu1 %v1013_v63, %s3263_s23  ;;  %v1014_v13 = vmul.f32 %v1013_v63, %v3533_v25 }
 0x9ed   :  { %v1114_v1 = vpop.permute.xlu0 %1113 }
 0x9ee   :  { %v1116_v2 = vmul.f32 %v1114_v1, %v1110_v58 }
 0x9f0   :  { %1118 = vrot.lane.b32.xlu0 %v1116_v2, %s3264_s24 }
 0x9f5   :  { %v1017_v5 = vpop.permute.xlu1 %1016 }
 0x9f6   :  { %v1019_v6 = vmul.f32 %v1017_v5, %v1013_v63 }
 0x9f8   :  { %1021 = vrot.lane.b32.xlu1 %v1019_v6, %s3264_s24 }
 0xa62   :  { %v1119_v7 = vpop.permute.xlu0 %1118 }
 0xa63   :  { %v3571_v9 = vadd.f32 %v1119_v7, %v1111_v49 }
 0xa65   :  { %3201 = vtanh.f32 %v3571_v9 }
 0xa6a   :  { %v1022_v14 = vpop.permute.xlu1 %1021 }
 0xa6b   :  { %v3575_v11 = vadd.f32 %v1022_v14, %v1014_v13  ;;  %v191_v13 = vadd.f32 %v3428_v50, %v3364_v12 }
 0xa6d   :  { %3203 = vtanh.f32 %v3575_v11 }
 0xa6f   :  { %v3202_v15 = vpop.eup %3201 }
 0xa70   :  { %1124 = vrot.lane.b32.xlu0 %v3202_v15, %s3263_s23 }
 0xa77   :  { %v3204_v16 = vpop.eup %3203 }
 0xa78   :  { %1027 = vrot.lane.b32.xlu1 %v3204_v16, %s3263_s23 }
 0xae2   :  { %v1125_v17 = vpop.permute.xlu0 %1124 }
 0xae3   :  { %v1127_v18 = vmul.f32 %v1125_v17, %v1110_v58 }
 0xae5   :  { %1129 = vrot.lane.b32.xlu0 %v1127_v18, %s3264_s24 }
 0xaea   :  { %v1028_v19 = vpop.permute.xlu1 %1027 }
 0xaeb   :  { %v1030_v20 = vmul.f32 %v1028_v19, %v1013_v63 }
 0xaed   :  { %1204 = vrot.lane.b32.xlu1 %v1030_v20, %s3264_s24 }
 0xb57   :  { %v1130_v21 = vpop.permute.xlu0 %1129 }
 0xb58   :  { %2828 = vmatmul.mubr.msk.f32.vlgmr.msra.gmra.mrb[14].mxu0 %vm204_vm6, %v1130_v21  ;;  %2850 = vmatmul.mubr.msk.f32.vlgmr.msra.gmra.mrb[8].mxu1 %vm204_vm6, %v1130_v21 }
 0xb59   :  { %3052 = vmatpush3.bf16.msra.mxu0 %v3442_v56  ;;  %2838 = vmatprep.mubr.msk.f32.mxu0 %vm3261_vm2, %v3262_v8 }
 0xb5a   :  { %3053 = vmatprep.subr.bf16.mxu0 %v3260_v0  ;;  %3064 = vmatpush3.bf16.msra.mxu1 %v3393_v38 }
 0xb5b   :  { %3065 = vmatprep.subr.bf16.mxu1 %v3260_v0  ;;  %2860 = vmatprep.mubr.msk.f32.mxu1 %vm3261_vm2, %v3262_v8 }
 0xb5d   :  { %3055 = vmatpush3.bf16.msra.mxu0 %v3453_v60 }
 0xb5e   :  { %3074 = vmatprep.subr.bf16.mxu0 %v3260_v0  ;;  %3067 = vmatpush3.bf16.msra.mxu1 %v3409_v43 }
 0xb5f   :  { %v1205_v22 = vpop.permute.xlu1 %1204  ;;  %3068 = vmatprep.subr.bf16.mxu1 %v3260_v0 }
 0xb60   :  { %2839 = vmatmul.mubr.msk.f32.vlgmr.msra.gmra.mrb[14].mxu0 %vm204_vm6, %v1205_v22 }
 0xb61   :  { %3076 = vmatpush3.bf16.msra.mxu0 %v3325_v4  ;;  %2882 = vmatprep.mubr.msk.f32.mxu0 %vm3261_vm2, %v3262_v8 }
 0xb62   :  { %3077 = vmatprep.subr.bf16.mxu0 %v3260_v0 }
 0xb65   :  { %3079 = vmatpush3.bf16.msra.mxu0 %v3346_v10 }
 0xb66   :  { %3080 = vmatprep.subr.bf16.mxu0 %v3260_v0 }
 0xc2b   :  { %v1371_v25 = vpop.f32.mrb[8].mxu1 }
 0xc2c   :  { %v1375_v26 = vadd.f32 %v1371_v25, %v186_v23  ;;  %v2851_v27 = vpop.f32.mrb[9].mxu1 }
 0xc2e   :  { %v2532_v28 = vmul.f32 -1.442695, %v1375_v26 }
 0xc30   :  { %3205 = vpow2.f32 %v2532_v28 }
 0xc33   :  { %v1274_v29 = vpop.f32.mrb[14].mxu0 }
 0xc34   :  { %v3137_v30 = vadd.f32 %v3478_v3, %v1274_v29  ;;  %v2840_v31 = vpop.f32.mrb[15].mxu0 }
 0xc36   :  { %v2529_v33 = vmul.f32 -1.442695, %v3137_v30 }
 0xc38   :  { %3207 = vpow2.f32 %v2529_v33 }
 0xc3a   :  { %v3206_v34 = vpop.eup %3205 }
 0xc3b   :  { %v1379_v35 = vadd.f32 1.0, %v3206_v34 }
 0xc3d   :  { %3209 = vrcp.f32 %v1379_v35 }
 0xc42   :  { %v3208_v36 = vpop.eup %3207 }
 0xc43   :  { %v1282_v37 = vadd.f32 1.0, %v3208_v36 }
 0xc45   :  { %3211 = vrcp.f32 %v1282_v37 }
 0xc47   :  { %v3210_v39 = vpop.eup %3209 }
 0xc48   :  { %v2533_v40 = vadd.f32 -1.0, %v3210_v39 }
 0xc4a   :  { %v1383_v51 = vmul.f32 %v2533_v40, %v3368_v24 }
 0xc4c   :  { %v1384_v32 = vadd.f32 %v3210_v39, %v1383_v51 }
 0xc4e   :  { %1387 = vrot.lane.b32.xlu0 %v1384_v32, %s3263_s23  ;;  %v1385_v57 = vmul.f32 %v1384_v32, %v3571_v9 }
 0xc4f   :  { %v3212_v41 = vpop.eup %3211 }
 0xc50   :  { %v2530_v42 = vadd.f32 -1.0, %v3212_v41 }
 0xc52   :  { %v1286_v44 = vmul.f32 %v2530_v42, %v3368_v24 }
 0xc54   :  { %v1287_v45 = vadd.f32 %v3212_v41, %v1286_v44 }
 0xc56   :  { %1290 = vrot.lane.b32.xlu1 %v1287_v45, %s3263_s23  ;;  %v1288_v59 = vmul.f32 %v1287_v45, %v3575_v11 }
 0xcc0   :  { %v1388_v46 = vpop.permute.xlu0 %1387 }
 0xcc1   :  { %v1390_v47 = vmul.f32 %v1388_v46, %v1384_v32 }
 0xcc3   :  { %1392 = vrot.lane.b32.xlu0 %v1390_v47, %s3264_s24 }
 0xcc8   :  { %v1291_v54 = vpop.permute.xlu1 %1290 }
 0xcc9   :  { %v1293_v55 = vmul.f32 %v1291_v54, %v1287_v45 }
 0xccb   :  { %1295 = vrot.lane.b32.xlu1 %v1293_v55, %s3264_s24 }
 0xd35   :  { %v1393_v48 = vpop.permute.xlu0 %1392 }
 0xd36   :  { %v3613_v58 = vadd.f32 %v1393_v48, %v1385_v57 }
 0xd38   :  { %3213 = vtanh.f32 %v3613_v58 }
 0xd3d   :  { %v1296_v61 = vpop.permute.xlu1 %1295 }
 0xd3e   :  { %v3617_v62 = vadd.f32 %v1296_v61, %v1288_v59 }
 0xd40   :  { %3215 = vtanh.f32 %v3617_v62 }
 0xd42   :  { %v3214_v63 = vpop.eup %3213 }
 0xd43   :  { %1398 = vrot.lane.b32.xlu0 %v3214_v63, %s3263_s23 }
 0xd4a   :  { %v3216_v1 = vpop.eup %3215 }
 0xd4b   :  { %1301 = vrot.lane.b32.xlu1 %v3216_v1, %s3263_s23 }
 0xdb5   :  { %v1399_v2 = vpop.permute.xlu0 %1398 }
 0xdb6   :  { %v1401_v5 = vmul.f32 %v1399_v2, %v1384_v32 }
 0xdb8   :  { %1403 = vrot.lane.b32.xlu0 %v1401_v5, %s3264_s24 }
 0xdbd   :  { %v1302_v6 = vpop.permute.xlu1 %1301 }
 0xdbe   :  { %v1304_v49 = vmul.f32 %v1302_v6, %v1287_v45 }
 0xdc0   :  { %1478 = vrot.lane.b32.xlu1 %v1304_v49, %s3264_s24 }
 0xe2a   :  { %v1404_v7 = vpop.permute.xlu0 %1403 }
 0xe2b   :  { %2861 = vmatmul.mubr.msk.f32.vlgmr.msra.gmra.mrb[10].mxu1 %vm204_vm6, %v1404_v7  ;;  %2883 = vmatmul.mubr.msk.f32.vlgmr.msra.gmra.mrb[16].mxu0 %vm204_vm6, %v1404_v7 }
 0xe2c   :  { %3070 = vmatpush3.bf16.msra.mxu1 %v3442_v56  ;;  %2871 = vmatprep.mubr.msk.f32.mxu1 %vm3261_vm2, %v3262_v8 }
 0xe2d   :  { %3071 = vmatprep.subr.bf16.mxu1 %v3260_v0  ;;  %3082 = vmatpush3.bf16.msra.mxu0 %v3393_v38 }
 0xe2e   :  { %3083 = vmatprep.subr.bf16.mxu0 %v3260_v0  ;;  %2893 = vmatprep.mubr.msk.f32.mxu0 %vm3261_vm2, %v3262_v8 }
 0xe30   :  { %3073 = vmatpush3.bf16.msra.mxu1 %v3453_v60 }
 0xe31   :  { %3092 = vmatprep.subr.bf16.mxu1 %v3260_v0  ;;  %3085 = vmatpush3.bf16.msra.mxu0 %v3409_v43 }
 0xe32   :  { %v1479_v9 = vpop.permute.xlu1 %1478  ;;  %3086 = vmatprep.subr.bf16.mxu0 %v3260_v0 }
 0xe33   :  { %2872 = vmatmul.mubr.msk.f32.vlgmr.msra.gmra.mrb[10].mxu1 %vm204_vm6, %v1479_v9 }
 0xe34   :  { %3094 = vmatpush3.bf16.msra.mxu1 %v3325_v4  ;;  %2915 = vmatprep.mubr.msk.f32.mxu1 %vm3261_vm2, %v3262_v8 }
 0xe35   :  { %3095 = vmatprep.subr.bf16.mxu1 %v3260_v0 }
 0xe38   :  { %3097 = vmatpush3.bf16.msra.mxu1 %v3346_v10 }
 0xe39   :  { %3098 = vmatprep.subr.bf16.mxu1 %v3260_v0 }
 0xefe   :  { %v1645_v14 = vpop.f32.mrb[16].mxu0 }
 0xeff   :  { %v1649_v11 = vadd.f32 %v1645_v14, %v191_v13  ;;  %v2884_v15 = vpop.f32.mrb[17].mxu0 }
 0xf01   :  { %v2539_v16 = vmul.f32 -1.442695, %v1649_v11 }
 0xf03   :  { %3217 = vpow2.f32 %v2539_v16 }
 0xf06   :  { %v1548_v17 = vpop.f32.mrb[10].mxu1 }
 0xf07   :  { %v3138_v18 = vadd.f32 %v3478_v3, %v1548_v17  ;;  %v2873_v19 = vpop.f32.mrb[11].mxu1 }
 0xf09   :  { %v2536_v20 = vmul.f32 -1.442695, %v3138_v18 }
 0xf0b   :  { %3219 = vpow2.f32 %v2536_v20 }
 0xf0d   :  { %v3218_v21 = vpop.eup %3217 }
 0xf0e   :  { %v1653_v22 = vadd.f32 1.0, %v3218_v21 }
 0xf10   :  { %3221 = vrcp.f32 %v1653_v22 }
 0xf15   :  { %v3220_v23 = vpop.eup %3219 }
 0xf16   :  { %v1556_v25 = vadd.f32 1.0, %v3220_v23 }
 0xf18   :  { %3223 = vrcp.f32 %v1556_v25 }
 0xf1a   :  { %v3222_v26 = vpop.eup %3221 }
 0xf1b   :  { %v2540_v27 = vadd.f32 -1.0, %v3222_v26 }
 0xf1d   :  { %v1657_v50 = vmul.f32 %v2540_v27, %v3368_v24 }
 0xf1f   :  { %v1658_v28 = vadd.f32 %v3222_v26, %v1657_v50 }
 0xf21   :  { %1661 = vrot.lane.b32.xlu0 %v1658_v28, %s3263_s23  ;;  %v1659_v39 = vmul.f32 %v1658_v28, %v3613_v58  ;;  %v196_v58 = vadd.f32 %v3364_v12, %v3434_v53 }
 0xf22   :  { %v3224_v29 = vpop.eup %3223 }
 0xf23   :  { %v2537_v30 = vadd.f32 -1.0, %v3224_v29 }
 0xf25   :  { %v1560_v31 = vmul.f32 %v2537_v30, %v3368_v24 }
 0xf27   :  { %v1561_v33 = vadd.f32 %v3224_v29, %v1560_v31 }
 0xf29   :  { %1564 = vrot.lane.b32.xlu1 %v1561_v33, %s3263_s23  ;;  %v1562_v32 = vmul.f32 %v1561_v33, %v3617_v62 }
 0xf93   :  { %v1662_v34 = vpop.permute.xlu0 %1661 }
 0xf94   :  { %v1664_v35 = vmul.f32 %v1662_v34, %v1658_v28 }
 0xf96   :  { %1666 = vrot.lane.b32.xlu0 %v1664_v35, %s3264_s24 }
 0xf9b   :  { %v1565_v36 = vpop.permute.xlu1 %1564 }
 0xf9c   :  { %v1567_v37 = vmul.f32 %v1565_v36, %v1561_v33 }
 0xf9e   :  { %1569 = vrot.lane.b32.xlu1 %v1567_v37, %s3264_s24 }
0x1008   :  { %v1667_v40 = vpop.permute.xlu0 %1666 }
0x1009   :  { %v3655_v51 = vadd.f32 %v1667_v40, %v1659_v39 }
0x100b   :  { %3225 = vtanh.f32 %v3655_v51 }
0x1010   :  { %v1570_v41 = vpop.permute.xlu1 %1569 }
0x1011   :  { %v3659_v42 = vadd.f32 %v1570_v41, %v1562_v32 }
0x1013   :  { %3227 = vtanh.f32 %v3659_v42 }
0x1015   :  { %v3226_v44 = vpop.eup %3225 }
0x1016   :  { %1672 = vrot.lane.b32.xlu0 %v3226_v44, %s3263_s23 }
0x101d   :  { %v3228_v45 = vpop.eup %3227 }
0x101e   :  { %1575 = vrot.lane.b32.xlu1 %v3228_v45, %s3263_s23 }
0x1088   :  { %v1673_v46 = vpop.permute.xlu0 %1672 }
0x1089   :  { %v1675_v47 = vmul.f32 %v1673_v46, %v1658_v28 }
0x108b   :  { %1677 = vrot.lane.b32.xlu0 %v1675_v47, %s3264_s24 }
0x1090   :  { %v1576_v54 = vpop.permute.xlu1 %1575 }
0x1091   :  { %v1578_v55 = vmul.f32 %v1576_v54, %v1561_v33 }
0x1093   :  { %1752 = vrot.lane.b32.xlu1 %v1578_v55, %s3264_s24 }
0x10fd   :  { %v1678_v57 = vpop.permute.xlu0 %1677 }
0x10fe   :  { %2894 = vmatmul.mubr.msk.f32.vlgmr.msra.gmra.mrb[18].mxu0 %vm204_vm6, %v1678_v57  ;;  %2916 = vmatmul.mubr.msk.f32.vlgmr.msra.gmra.mrb[12].mxu1 %vm204_vm6, %v1678_v57 }
0x10ff   :  { %3088 = vmatpush3.bf16.msra.mxu0 %v3442_v56  ;;  %2904 = vmatprep.mubr.msk.f32.mxu0 %vm3261_vm2, %v3262_v8 }
0x1100   :  { %3089 = vmatprep.subr.bf16.mxu0 %v3260_v0  ;;  %3100 = vmatpush3.bf16.msra.mxu1 %v3393_v38 }
0x1101   :  { %3101 = vmatprep.subr.bf16.mxu1 %v3260_v0  ;;  %2926 = vmatprep.mubr.msk.f32.mxu1 %vm3261_vm2, %v3262_v8 }
0x1103   :  { %3091 = vmatpush3.bf16.msra.mxu0 %v3453_v60 }
0x1104   :  { %3110 = vmatprep.subr.bf16.mxu0 %v3260_v0  ;;  %3103 = vmatpush3.bf16.msra.mxu1 %v3409_v43 }
0x1105   :  { %v1753_v48 = vpop.permute.xlu1 %1752  ;;  %3104 = vmatprep.subr.bf16.mxu1 %v3260_v0 }
0x1106   :  { %2905 = vmatmul.mubr.msk.f32.vlgmr.msra.gmra.mrb[18].mxu0 %vm204_vm6, %v1753_v48 }
0x1107   :  { %3112 = vmatpush3.bf16.msra.mxu0 %v3325_v4  ;;  %2948 = vmatprep.mubr.msk.f32.mxu0 %vm3261_vm2, %v3262_v8 }
0x1108   :  { %3113 = vmatprep.subr.bf16.mxu0 %v3260_v0 }
0x110b   :  { %3115 = vmatpush3.bf16.msra.mxu0 %v3346_v10 }
0x110c   :  { %3116 = vmatprep.subr.bf16.mxu0 %v3260_v0 }
0x11d1   :  { %v1919_v59 = vpop.f32.mrb[12].mxu1 }
0x11d2   :  { %v1923_v61 = vadd.f32 %v1919_v59, %v196_v58  ;;  %v2917_v62 = vpop.f32.mrb[13].mxu1 }
0x11d4   :  { %v2546_v63 = vmul.f32 -1.442695, %v1923_v61 }
0x11d6   :  { %3229 = vpow2.f32 %v2546_v63 }
0x11d9   :  { %v1822_v1 = vpop.f32.mrb[18].mxu0 }
0x11da   :  { %v3139_v4 = vadd.f32 %v3478_v3, %v1822_v1  ;;  %v2906_v2 = vpop.f32.mrb[19].mxu0 }
0x11dc   :  { %v2543_v5 = vmul.f32 -1.442695, %v3139_v4 }
0x11de   :  { %3231 = vpow2.f32 %v2543_v5 }
0x11e0   :  { %v3230_v6 = vpop.eup %3229 }
0x11e1   :  { %v1927_v49 = vadd.f32 1.0, %v3230_v6 }
0x11e3   :  { %3233 = vrcp.f32 %v1927_v49 }
0x11e8   :  { %v3232_v10 = vpop.eup %3231 }
0x11e9   :  { %v1830_v7 = vadd.f32 1.0, %v3232_v10 }
0x11eb   :  { %3235 = vrcp.f32 %v1830_v7 }
0x11ed   :  { %v3234_v9 = vpop.eup %3233 }
0x11ee   :  { %v2547_v13 = vadd.f32 -1.0, %v3234_v9 }
0x11f0   :  { %v1931_v12 = vmul.f32 %v2547_v13, %v3368_v24 }
0x11f2   :  { %v1932_v53 = vadd.f32 %v3234_v9, %v1931_v12 }
0x11f4   :  { %1935 = vrot.lane.b32.xlu0 %v1932_v53, %s3263_s23  ;;  %v1933_v21 = vmul.f32 %v1932_v53, %v3655_v51 }
0x11f5   :  { %v3236_v14 = vpop.eup %3235 }
0x11f6   :  { %v2544_v11 = vadd.f32 -1.0, %v3236_v14 }
0x11f8   :  { %v1834_v15 = vmul.f32 %v2544_v11, %v3368_v24 }
0x11fa   :  { %v1835_v16 = vadd.f32 %v3236_v14, %v1834_v15 }
0x11fc   :  { %1838 = vrot.lane.b32.xlu1 %v1835_v16, %s3263_s23  ;;  %v1836_v25 = vmul.f32 %v1835_v16, %v3659_v42 }
0x1266   :  { %v1936_v17 = vpop.permute.xlu0 %1935 }
0x1267   :  { %v1938_v18 = vmul.f32 %v1936_v17, %v1932_v53 }
0x1269   :  { %1940 = vrot.lane.b32.xlu0 %v1938_v18, %s3264_s24 }
0x126e   :  { %v1839_v19 = vpop.permute.xlu1 %1838 }
0x126f   :  { %v1841_v20 = vmul.f32 %v1839_v19, %v1835_v16 }
0x1271   :  { %1843 = vrot.lane.b32.xlu1 %v1841_v20, %s3264_s24 }
0x12db   :  { %v1941_v22 = vpop.permute.xlu0 %1940 }
0x12dc   :  { %v3697_v23 = vadd.f32 %v1941_v22, %v1933_v21 }
0x12de   :  { %3237 = vtanh.f32 %v3697_v23 }
0x12e3   :  { %v1844_v26 = vpop.permute.xlu1 %1843 }
0x12e4   :  { %v3701_v27 = vadd.f32 %v1844_v26, %v1836_v25 }
0x12e6   :  { %3239 = vtanh.f32 %v3701_v27 }
0x12e8   :  { %v3238_v50 = vpop.eup %3237 }
0x12e9   :  { %1946 = vrot.lane.b32.xlu0 %v3238_v50, %s3263_s23 }
0x12f0   :  { %v3240_v28 = vpop.eup %3239 }
0x12f1   :  { %1849 = vrot.lane.b32.xlu1 %v3240_v28, %s3263_s23  ;;  %v2401_v28 = vld [vmem:[%s3782_s7] sm:$0xff] }
0x135b   :  { %v1947_v29 = vpop.permute.xlu0 %1946 }
0x135c   :  { %v1949_v30 = vmul.f32 %v1947_v29, %v1932_v53  ;;  %v2402_v29 = vld [vmem:[%s3782_s7 + $0x8] sm:$0xff] }
0x135e   :  { %1951 = vrot.lane.b32.xlu0 %v1949_v30, %s3264_s24  ;;  %v3129_v30 = vpack.c.bf16 %v2402_v29, %v2401_v28 }
0x1363   :  { %v1850_v31 = vpop.permute.xlu1 %1849 }
0x1364   :  { %v1852_v33 = vmul.f32 %v1850_v31, %v1835_v16  ;;  %v2404_v31 = vld [vmem:[%s3782_s7 + $0x18] sm:$0xff] }
0x1366   :  { %2026 = vrot.lane.b32.xlu1 %v1852_v33, %s3264_s24 }
0x13d0   :  { %v1952_v34 = vpop.permute.xlu0 %1951 }
0x13d1   :  { %2927 = vmatmul.mubr.msk.f32.vlgmr.msra.gmra.mrb[14].mxu1 %vm204_vm6, %v1952_v34  ;;  %2949 = vmatmul.mubr.msk.f32.vlgmr.msra.gmra.mrb[20].mxu0 %vm204_vm6, %v1952_v34 }
0x13d2   :  { %3106 = vmatpush3.bf16.msra.mxu1 %v3442_v56  ;;  %2937 = vmatprep.mubr.msk.f32.mxu1 %vm3261_vm2, %v3262_v8 }
0x13d3   :  { %3107 = vmatprep.subr.bf16.mxu1 %v3260_v0  ;;  %3118 = vmatpush3.bf16.msra.mxu0 %v3393_v38  ;;  %v3259_v38 = vld [vmem:[%s3778_s3] ss:$0 sm:$0xff] }
0x13d4   :  { %3119 = vmatprep.subr.bf16.mxu0 %v3260_v0  ;;  %2959 = vmatprep.mubr.msk.f32.mxu0 %vm3261_vm2, %v3262_v8  ;;  %v201_v36 = vadd.f32 %v3259_v38, %v3432_v52 }
0x13d6   :  { %3109 = vmatpush3.bf16.msra.mxu1 %v3453_v60 }
0x13d7   :  { %3121 = vmatpush3.bf16.msra.mxu0 %v3409_v43  ;;  %3128 = vmatprep.subr.bf16.mxu1 %v3260_v0 }
0x13d8   :  { %v2027_v35 = vpop.permute.xlu1 %2026  ;;  %3122 = vmatprep.subr.bf16.mxu0 %v3260_v0 }
0x13d9   :  { %2938 = vmatmul.mubr.msk.f32.vlgmr.msra.gmra.mrb[14].mxu1 %vm204_vm6, %v2027_v35  ;;  %v14_v35 = vstv %s3783_s8 }
0x13da   :  { %2981 = vmatprep.mubr.msk.f32.mxu1 %vm3261_vm2, %v3262_v8  ;;  %3130 = vmatpush3.bf16.msra.mxu1 %v3129_v30  ;;  %15 = vst [vmem:[#allocation2] sm:$0x1] %v14_v35 }
0x13db   :  { %3131 = vmatprep.subr.bf16.mxu1 %v3260_v0 }
0x14a4   :  { %v2193_v37 = vpop.f32.mrb[20].mxu0 }
0x14a5   :  { %v2197_v39 = vadd.f32 %v2193_v37, %v201_v36  ;;  %v2950_v40 = vpop.f32.mrb[21].mxu0 }
0x14a7   :  { %v2553_v43 = vmul.f32 -1.442695, %v2197_v39  ;;  %v2559_v39 = vld [vmem:[#allocation2] ss:$0 sm:$0xff] }
0x14a9   :  { %3241 = vpow2.f32 %v2553_v43 }
0x14ac   :  { %v2096_v51 = vpop.f32.mrb[14].mxu1 }
0x14ad   :  { %v3140_v32 = vadd.f32 %v3478_v3, %v2096_v51  ;;  %v2939_v41 = vpop.f32.mrb[15].mxu1 }
0x14af   :  { %v2550_v42 = vmul.f32 -1.442695, %v3140_v32 }
0x14b1   :  { %3243 = vpow2.f32 %v2550_v42 }
0x14b3   :  { %v3242_v44 = vpop.eup %3241 }
0x14b4   :  { %v2201_v45 = vadd.f32 1.0, %v3242_v44 }
0x14b6   :  { %3245 = vrcp.f32 %v2201_v45 }
0x14bb   :  { %v3244_v46 = vpop.eup %3243 }
0x14bc   :  { %v2104_v47 = vadd.f32 1.0, %v3244_v46 }
0x14be   :  { %3247 = vrcp.f32 %v2104_v47 }
0x14c0   :  { %v3246_v54 = vpop.eup %3245 }
0x14c1   :  { %v2554_v55 = vadd.f32 -1.0, %v3246_v54 }
0x14c3   :  { %v2205_v52 = vmul.f32 %v2554_v55, %v3368_v24 }
0x14c5   :  { %v2206_v57 = vadd.f32 %v3246_v54, %v2205_v52 }
0x14c7   :  { %2209 = vrot.lane.b32.xlu0 %v2206_v57, %s3263_s23  ;;  %v2207_v2 = vmul.f32 %v2206_v57, %v3697_v23 }
0x14c8   :  { %v3248_v48 = vpop.eup %3247 }
0x14c9   :  { %v2551_v58 = vadd.f32 -1.0, %v3248_v48 }
0x14cb   :  { %v2108_v59 = vmul.f32 %v2551_v58, %v3368_v24 }
0x14cd   :  { %v2109_v61 = vadd.f32 %v3248_v48, %v2108_v59 }
0x14cf   :  { %2112 = vrot.lane.b32.xlu1 %v2109_v61, %s3263_s23  ;;  %v2110_v49 = vmul.f32 %v2109_v61, %v3701_v27 }
0x1539   :  { %v2210_v62 = vpop.permute.xlu0 %2209 }
0x153a   :  { %v2212_v63 = vmul.f32 %v2210_v62, %v2206_v57 }
0x153c   :  { %2214 = vrot.lane.b32.xlu0 %v2212_v63, %s3264_s24 }
0x1541   :  { %v2113_v1 = vpop.permute.xlu1 %2112 }
0x1542   :  { %v2115_v4 = vmul.f32 %v2113_v1, %v2109_v61 }
0x1544   :  { %2117 = vrot.lane.b32.xlu1 %v2115_v4, %s3264_s24 }
0x15ae   :  { %v2215_v5 = vpop.permute.xlu0 %2214 }
0x15af   :  { %v2217_v6 = vadd.f32 %v2215_v5, %v2207_v2 }
0x15b1   :  { %3249 = vtanh.f32 %v2217_v6 }
0x15b6   :  { %v2118_v10 = vpop.permute.xlu1 %2117 }
0x15b7   :  { %v2120_v7 = vadd.f32 %v2118_v10, %v2110_v49 }
0x15b9   :  { %3251 = vtanh.f32 %v2120_v7 }
0x15bb   :  { %v3250_v9 = vpop.eup %3249 }
0x15bc   :  { %2220 = vrot.lane.b32.xlu0 %v3250_v9, %s3263_s23 }
0x15c3   :  { %v3252_v13 = vpop.eup %3251 }
0x15c4   :  { %2123 = vrot.lane.b32.xlu1 %v3252_v13, %s3263_s23 }
0x162e   :  { %v2221_v12 = vpop.permute.xlu0 %2220 }
0x162f   :  { %v2223_v53 = vmul.f32 %v2221_v12, %v2206_v57 }
0x1631   :  { %2225 = vrot.lane.b32.xlu0 %v2223_v53, %s3264_s24 }
0x1636   :  { %v2124_v14 = vpop.permute.xlu1 %2123 }
0x1637   :  { %v2126_v11 = vmul.f32 %v2124_v14, %v2109_v61 }
0x1639   :  { %2300 = vrot.lane.b32.xlu1 %v2126_v11, %s3264_s24 }
0x16a3   :  { %v2226_v15 = vpop.permute.xlu0 %2225 }
0x16a4   :  { %2960 = vmatmul.mubr.msk.f32.vlgmr.msra.gmra.mrb[22].mxu0 %vm204_vm6, %v2226_v15 }
0x16a5   :  { %3124 = vmatpush3.bf16.msra.mxu0 %v3442_v56  ;;  %2970 = vmatprep.mubr.msk.f32.mxu0 %vm3261_vm2, %v3262_v8 }
0x16a6   :  { %3125 = vmatprep.subr.bf16.mxu0 %v3260_v0 }
0x16a9   :  { %3127 = vmatpush3.bf16.msra.mxu0 %v3453_v60 }
0x16ab   :  { %v2301_v16 = vpop.permute.xlu1 %2300 }
0x16ac   :  { %2971 = vmatmul.mubr.msk.f32.vlgmr.msra.gmra.mrb[22].mxu0 %vm204_vm6, %v2301_v16 }
0x177f   :  { %v2370_v17 = vpop.f32.mrb[22].mxu0 }
0x1780   :  { %v3141_v18 = vadd.f32 %v3478_v3, %v2370_v17  ;;  %v2972_v19 = vpop.f32.mrb[23].mxu0 }
0x1782   :  { %v2557_v20 = vmul.f32 -1.442695, %v3141_v18 }
0x1784   :  { %3253 = vpow2.f32 %v2557_v20 }
0x178e   :  { %v3254_v21 = vpop.eup %3253 }
0x178f   :  { %v2378_v22 = vadd.f32 1.0, %v3254_v21 }
0x1791   :  { %3255 = vrcp.f32 %v2378_v22 }
0x179b   :  { %v3256_v56 = vpop.eup %3255 }
0x179c   :  { %v2558_v23 = vadd.f32 -1.0, %v3256_v56 }
0x179e   :  { %v2382_v8 = vmul.f32 %v2558_v23, %v3368_v24  ;;  %v2403_v24 = vld [vmem:[%s3782_s7 + $0x10] sm:$0xff] }
0x179f   :  { %v3132_v33 = vpack.c.bf16 %v2404_v31, %v2403_v24 }
0x17a0   :  { %v2383_v25 = vadd.f32 %v3256_v56, %v2382_v8 }
0x17a1   :  { %3133 = vmatpush3.bf16.msra.mxu1 %v3132_v33 }
0x17a2   :  { %2386 = vrot.lane.b32.xlu0 %v2383_v25, %s3263_s23  ;;  %v2384_v27 = vmul.f32 %v2383_v25, %v2120_v7 }
0x1814   :  { %v2387_v60 = vpop.permute.xlu0 %2386 }
0x1815   :  { %v2389_v26 = vmul.f32 %v2387_v60, %v2383_v25 }
0x1817   :  { %2391 = vrot.lane.b32.xlu1 %v2389_v26, %s3264_s24 }
0x1889   :  { %v2392_v50 = vpop.permute.xlu1 %2391 }
0x188a   :  { %v2394_v3 = vadd.f32 %v2392_v50, %v2384_v27 }
0x188c   :  { %3257 = vtanh.f32 %v2394_v3 }
0x1896   :  { %v3258_v34 = vpop.eup %3257 }
0x1897   :  { %2397 = vrot.lane.b32.xlu0 %v3258_v34, %s3263_s23 }
0x1909   :  { %v2398_v38 = vpop.permute.xlu0 %2397 }
0x190a   :  { %v2400_v36 = vmul.f32 %v2398_v38, %v2383_v25 }
0x190c   :  { %2413 = vrot.lane.b32.xlu1 %v2400_v36, %s3264_s24 }
0x197e   :  { %v2414_v37 = vpop.permute.xlu1 %2413 }
0x197f   :  { %2982 = vmatmul.mubr.msk.f32.vlgmr.msra.gmra.mrb[16].mxu1 %vm204_vm6, %v2414_v37 }
0x1a52   :  { %v2483_v40 = vpop.f32.mrb[16].mxu1 }
0x1a53   :  { %v2484_v0 = vadd.f32 %v2559_v39, %v2483_v40  ;;  %v2983_v43 = vpop.f32.mrb[17].mxu1 }
0x1a55   :  { %2488 = vst.msk [vmem:[%s3784_s9] sm:$0xff] %vm2487_vm7, %v2484_v0 }

</bundles_post_ra>
